<compile_context>
chip_gen: v6e
topology: v6e:2x2x1
jax: 0.10.0
libtpu: 0.0.40
codegen_flags: <defaults>
</compile_context>

<pallas_src>
import functools
import math

import jax
import jax.numpy as jnp
from jax import lax
from jax.experimental import pallas as pl
from jax.experimental.pallas import tpu as pltpu


def mha_kernel(e_ref, wqkv_ref, bqkv_ref, wo_ref, bo_ref, out_ref,
               qkv_scr, hacc_scr, *, num_heads, key_tile):
    S, D = e_ref.shape
    dk = D // num_heads
    kt = pl.program_id(0)

    @pl.when(kt == 0)
    def _init():
        # Fused Q/K/V projection: one [S,D]x[D,3D] MXU matmul (bf16 in, f32 acc).
        # 1/sqrt(d_k) is already folded into the Q columns of wqkv / bqkv.
        qkv = jnp.dot(e_ref[...], wqkv_ref[...],
                      preferred_element_type=jnp.float32) + bqkv_ref[...]
        qkv_scr[...] = qkv.astype(qkv_scr.dtype)
        hacc_scr[...] = jnp.zeros_like(hacc_scr)

    # Key tile for this grid step: sublane slice of the resident K/V projections.
    k0 = pl.multiple_of(kt * key_tile, key_tile)
    qkv_all = qkv_scr[...]                       # (S, 3D) bf16
    q_all = qkv_all[:, 0:D]                      # (S, D)  scaled Q
    kv_tile = qkv_scr[pl.ds(k0, key_tile), :]    # (tk, 3D)
    k_tile = kv_tile[:, D:2 * D]                 # (tk, D)
    v_tile = kv_tile[:, 2 * D:3 * D]             # (tk, D)

    # Per-head attention via static lane slices (no reshape/transpose of heads).
    head_outs = []
    for h in range(num_heads):
        lo = h * dk
        qh = q_all[:, lo:lo + dk]                # (S, dk)
        kh = k_tile[:, lo:lo + dk]               # (tk, dk)
        vh = v_tile[:, lo:lo + dk]               # (tk, dk)

        # scores[q, k] = <Q_h[q,:], K_h[k,:]>; contraction dims given explicitly
        # so no transposed copy is materialized.
        s = lax.dot_general(qh, kh, (((1,), (1,)), ((), ())),
                            preferred_element_type=jnp.float32)  # (S, tk) f32

        # torch.softmax(..., dim=1): normalize over the *query* axis (axis 0).
        # Each key column is fully resident, so key tiling is exact.
        m = jnp.max(s, axis=0, keepdims=True)
        p = jnp.exp(s - m)
        denom = jnp.sum(p, axis=0, keepdims=True)
        imp = p * pl.reciprocal(denom, approx=True)

        head_outs.append(
            jnp.dot(imp.astype(vh.dtype), vh,
                    preferred_element_type=jnp.float32))          # (S, dk) f32

    # Accumulate this key tile's contribution, heads laid out lane-dense in [S, D].
    hacc_scr[...] += jnp.concatenate(head_outs, axis=-1)

    @pl.when(kt == pl.num_programs(0) - 1)
    def _finalize():
        out = jnp.dot(hacc_scr[...].astype(wo_ref.dtype), wo_ref[...],
                      preferred_element_type=jnp.float32) + bo_ref[...]
        out_ref[...] = out.astype(out_ref.dtype)


def multi_head_attention(E, params, num_heads, *, key_tile=None,
                         compute_dtype=jnp.bfloat16):
    """E: [S, D] float32; params: (Wq, bq, Wk, bk, Wv, bv, Wo, bo) PyTorch-layout."""
    S, D = E.shape
    assert D % num_heads == 0
    dk = D // num_heads
    Wq, bq, Wk, bk, Wv, bv, Wo, bo = params
    scale = 1.0 / math.sqrt(dk)

    # Pre-transpose to [in, out] major, fold the 1/sqrt(d_k) scale into Wq/bq,
    # and fuse Q/K/V weights into a single [D, 3D] operand. Biases stay f32.
    wqkv = jnp.concatenate([Wq.T * scale, Wk.T, Wv.T], axis=1).astype(compute_dtype)
    bqkv = jnp.concatenate([bq * scale, bk, bv]).reshape(1, 3 * D).astype(jnp.float32)
    wo_t = Wo.T.astype(compute_dtype)
    bo_r = bo.reshape(1, D).astype(jnp.float32)

    if key_tile is None:
        key_tile = S
    assert S % key_tile == 0 and key_tile % 8 == 0
    num_kt = S // key_tile

    kernel = functools.partial(mha_kernel, num_heads=num_heads, key_tile=key_tile)

    return pl.pallas_call(
        kernel,
        out_shape=jax.ShapeDtypeStruct((S, D), jnp.float32),
        grid=(num_kt,),
        in_specs=[
            pl.BlockSpec((S, D), lambda k: (0, 0)),        # E (resident)
            pl.BlockSpec((D, 3 * D), lambda k: (0, 0)),    # fused W_QKV^T (resident)
            pl.BlockSpec((1, 3 * D), lambda k: (0, 0)),    # fused bias
            pl.BlockSpec((D, D), lambda k: (0, 0)),        # W_O^T (resident)
            pl.BlockSpec((1, D), lambda k: (0, 0)),        # b_O
        ],
        out_specs=pl.BlockSpec((S, D), lambda k: (0, 0)),
        scratch_shapes=[
            pltpu.VMEM((S, 3 * D), compute_dtype),   # Q/K/V projections
            pltpu.VMEM((S, D), jnp.float32),         # head-concat att accumulator
        ],
        compiler_params=pltpu.CompilerParams(
            dimension_semantics=("arbitrary",),      # key axis is a reduction
            vmem_limit_bytes=32 * 1024 * 1024,
        ),
    )(E.astype(compute_dtype), wqkv, bqkv, wo_t, bo_r)


def _reference(E, params, num_heads):
    """Pure-JAX f32 reference mirroring the PyTorch forward (incl. dim=1 softmax)."""
    Wq, bq, Wk, bk, Wv, bv, Wo, bo = params
    S, D = E.shape
    dk = D // num_heads
    Q = E @ Wq.T + bq
    K = E @ Wk.T + bk
    V = E @ Wv.T + bv
    Qh = Q.reshape(S, num_heads, dk).transpose(1, 0, 2)
    Kh = K.reshape(S, num_heads, dk).transpose(1, 0, 2)
    Vh = V.reshape(S, num_heads, dk).transpose(1, 0, 2)
    scores = jnp.einsum('hqd,hkd->hqk', Qh, Kh) / math.sqrt(D / num_heads)
    imp = jax.nn.softmax(scores, axis=1)     # dim=1: query axis, as in the module
    att = jnp.einsum('hqk,hkd->hqd', imp, Vh)
    Hcat = att.transpose(1, 0, 2).reshape(S, D)
    return Hcat @ Wo.T + bo


if __name__ == "__main__":
    SEQ, D_MODEL, NUM_HEADS, KEY_TILE = 128, 32, 4, 64   # grid of 2 key tiles

    key = jax.random.PRNGKey(0)
    keys = jax.random.split(key, 9)
    bound = 1.0 / math.sqrt(D_MODEL)  # nn.Linear-style uniform init, deterministic

    E = jax.random.normal(keys[0], (SEQ, D_MODEL), dtype=jnp.float32)
    Wq = jax.random.uniform(keys[1], (D_MODEL, D_MODEL), jnp.float32, -bound, bound)
    bq = jax.random.uniform(keys[2], (D_MODEL,), jnp.float32, -bound, bound)
    Wk = jax.random.uniform(keys[3], (D_MODEL, D_MODEL), jnp.float32, -bound, bound)
    bk = jax.random.uniform(keys[4], (D_MODEL,), jnp.float32, -bound, bound)
    Wv = jax.random.uniform(keys[5], (D_MODEL, D_MODEL), jnp.float32, -bound, bound)
    bv = jax.random.uniform(keys[6], (D_MODEL,), jnp.float32, -bound, bound)
    Wo = jax.random.uniform(keys[7], (D_MODEL, D_MODEL), jnp.float32, -bound, bound)
    bo = jax.random.uniform(keys[8], (D_MODEL,), jnp.float32, -bound, bound)

    params = (Wq, bq, Wk, bk, Wv, bv, Wo, bo)

    out = multi_head_attention(E, params, NUM_HEADS, key_tile=KEY_TILE)
    out = jax.block_until_ready(out)

    ref = _reference(E, params, NUM_HEADS)
    assert out.shape == (SEQ, D_MODEL)
    # Tolerance accounts for bf16 MXU operands + approx EUP reciprocal vs f32 ref.
    assert jnp.allclose(out, ref, atol=5e-2, rtol=5e-2), "mismatch vs JAX reference"

    print("KERNEL_OK")
</pallas_src>

<mosaic_0001>
module attributes {stable_mosaic.version = 11 : i64} {
  func.func @mha_kernel(%arg0: i32, %arg1: memref<128x32xbf16, #tpu.memory_space<vmem>>, %arg2: memref<32x96xbf16, #tpu.memory_space<vmem>>, %arg3: memref<1x96xf32, #tpu.memory_space<vmem>>, %arg4: memref<32x32xbf16, #tpu.memory_space<vmem>>, %arg5: memref<1x32xf32, #tpu.memory_space<vmem>>, %arg6: memref<128x32xf32, #tpu.memory_space<vmem>>, %arg7: memref<128x96xbf16, #tpu.memory_space<vmem>>, %arg8: memref<128x32xf32, #tpu.memory_space<vmem>>) attributes {dimension_semantics = [#tpu.dimension_semantics<arbitrary>], iteration_bounds = array<i64: 2>, scalar_prefetch = 0 : i64, scratch_operands = 2 : i64, tpu.core_type = #tpu.core_type<tc>, window_params = [{pipeline_mode = #tpu.pipeline_mode<synchronous>, transform_indices = @transform_0, window_bounds = array<i64: 128, 32>}, {pipeline_mode = #tpu.pipeline_mode<synchronous>, transform_indices = @transform_1, window_bounds = array<i64: 32, 96>}, {pipeline_mode = #tpu.pipeline_mode<synchronous>, transform_indices = @transform_2, window_bounds = array<i64: 1, 96>}, {pipeline_mode = #tpu.pipeline_mode<synchronous>, transform_indices = @transform_3, window_bounds = array<i64: 32, 32>}, {pipeline_mode = #tpu.pipeline_mode<synchronous>, transform_indices = @transform_4, window_bounds = array<i64: 1, 32>}, {pipeline_mode = #tpu.pipeline_mode<synchronous>, transform_indices = @transform_5, window_bounds = array<i64: 128, 32>}]} {
    %c0_i32 = arith.constant 0 : i32
    %0 = arith.cmpi eq, %arg0, %c0_i32 : i32
    %1 = arith.extui %0 : i1 to i32
    %c0_i32_0 = arith.constant 0 : i32
    %2 = arith.cmpi ne, %1, %c0_i32_0 : i32
    scf.if %2 {
      %c0_23 = arith.constant 0 : index
      %c0_24 = arith.constant 0 : index
      %82 = vector.load %arg1[%c0_23, %c0_24] : memref<128x32xbf16, #tpu.memory_space<vmem>>, vector<128x32xbf16>
      %c0_25 = arith.constant 0 : index
      %c0_26 = arith.constant 0 : index
      %83 = vector.load %arg2[%c0_25, %c0_26] : memref<32x96xbf16, #tpu.memory_space<vmem>>, vector<32x96xbf16>
      %cst_27 = arith.constant dense<0.000000e+00> : vector<128x96xf32>
      %84 = tpu.matmul %82, %83, %cst_27 {dimension_numbers = #tpu.dot_dimension_numbers<[1], [0], [0], [1], [0, 0, 1, 1], [], []>} : vector<128x32xbf16>, vector<32x96xbf16>, vector<128x96xf32> -> vector<128x96xf32>
      %c0_28 = arith.constant 0 : index
      %c0_29 = arith.constant 0 : index
      %85 = vector.load %arg3[%c0_28, %c0_29] : memref<1x96xf32, #tpu.memory_space<vmem>>, vector<1x96xf32>
      %86 = vector.broadcast %85 : vector<1x96xf32> to vector<128x96xf32>
      %87 = arith.addf %84, %86 : vector<128x96xf32>
      %88 = arith.truncf %87 : vector<128x96xf32> to vector<128x96xbf16>
      %c0_30 = arith.constant 0 : index
      %c0_31 = arith.constant 0 : index
      %89 = vector.load %arg7[%c0_30, %c0_31] : memref<128x96xbf16, #tpu.memory_space<vmem>>, vector<128x96xbf16>
      tpu.vector_store %arg7[%c0_30, %c0_31], %88 {strides = array<i32>} : memref<128x96xbf16, #tpu.memory_space<vmem>>, vector<128x96xbf16>,
      %cst_32 = arith.constant 0.000000e+00 : f32
      %90 = vector.broadcast %cst_32 : f32 to vector<128x32xf32>
      %c0_33 = arith.constant 0 : index
      %c0_34 = arith.constant 0 : index
      %91 = vector.load %arg8[%c0_33, %c0_34] : memref<128x32xf32, #tpu.memory_space<vmem>>, vector<128x32xf32>
      tpu.vector_store %arg8[%c0_33, %c0_34], %90 {strides = array<i32>} : memref<128x32xf32, #tpu.memory_space<vmem>>, vector<128x32xf32>,
    } else {
    }
    %c64_i32 = arith.constant 64 : i32
    %3 = arith.muli %arg0, %c64_i32 : i32
    %4 = tpu.assume_multiple %3, 64 : i32
    %c0 = arith.constant 0 : index
    %c0_1 = arith.constant 0 : index
    %5 = vector.load %arg7[%c0, %c0_1] : memref<128x96xbf16, #tpu.memory_space<vmem>>, vector<128x96xbf16>
    %6 = vector.extract_strided_slice %5 {offsets = [0, 0], sizes = [128, 32], strides = [1, 1]} : vector<128x96xbf16> to vector<128x32xbf16>
    %7 = arith.index_cast %4 : i32 to index
    %c0_2 = arith.constant 0 : index
    %8 = vector.load %arg7[%7, %c0_2] : memref<128x96xbf16, #tpu.memory_space<vmem>>, vector<64x96xbf16>
    %9 = vector.extract_strided_slice %8 {offsets = [0, 32], sizes = [64, 32], strides = [1, 1]} : vector<64x96xbf16> to vector<64x32xbf16>
    %10 = vector.extract_strided_slice %8 {offsets = [0, 64], sizes = [64, 32], strides = [1, 1]} : vector<64x96xbf16> to vector<64x32xbf16>
    %11 = vector.extract_strided_slice %6 {offsets = [0, 0], sizes = [128, 8], strides = [1, 1]} : vector<128x32xbf16> to vector<128x8xbf16>
    %12 = vector.extract_strided_slice %9 {offsets = [0, 0], sizes = [64, 8], strides = [1, 1]} : vector<64x32xbf16> to vector<64x8xbf16>
    %13 = vector.extract_strided_slice %10 {offsets = [0, 0], sizes = [64, 8], strides = [1, 1]} : vector<64x32xbf16> to vector<64x8xbf16>
    %cst = arith.constant dense<0.000000e+00> : vector<128x64xf32>
    %14 = tpu.matmul %11, %12, %cst {dimension_numbers = #tpu.dot_dimension_numbers<[1], [1], [0], [0], [0, 0, 1, 0], [], []>} : vector<128x8xbf16>, vector<64x8xbf16>, vector<128x64xf32> -> vector<128x64xf32>
    %cst_3 = arith.constant dense<0xFF800000> : vector<64xf32>
    %15 = vector.multi_reduction <maximumf>, %14, %cst_3 [0] : vector<128x64xf32> to vector<64xf32>
    %16 = vector.shape_cast %15 : vector<64xf32> to vector<1x64xf32>
    %17 = vector.broadcast %16 : vector<1x64xf32> to vector<128x64xf32>
    %18 = arith.subf %14, %17 : vector<128x64xf32>
    %19 = math.exp %18 : vector<128x64xf32>
    %cst_4 = arith.constant dense<0.000000e+00> : vector<64xf32>
    %20 = vector.multi_reduction <add>, %19, %cst_4 [0] : vector<128x64xf32> to vector<64xf32>
    %21 = vector.shape_cast %20 : vector<64xf32> to vector<1x64xf32>
    %22 = tpu.reciprocal %21 {approx = true} : vector<1x64xf32> -> vector<1x64xf32>
    %23 = vector.broadcast %22 : vector<1x64xf32> to vector<128x64xf32>
    %24 = arith.mulf %19, %23 : vector<128x64xf32>
    %25 = arith.truncf %24 : vector<128x64xf32> to vector<128x64xbf16>
    %cst_5 = arith.constant dense<0.000000e+00> : vector<128x8xf32>
    %26 = tpu.matmul %25, %13, %cst_5 {dimension_numbers = #tpu.dot_dimension_numbers<[1], [0], [0], [1], [0, 0, 1, 1], [], []>} : vector<128x64xbf16>, vector<64x8xbf16>, vector<128x8xf32> -> vector<128x8xf32>
    %27 = vector.extract_strided_slice %6 {offsets = [0, 8], sizes = [128, 8], strides = [1, 1]} : vector<128x32xbf16> to vector<128x8xbf16>
    %28 = vector.extract_strided_slice %9 {offsets = [0, 8], sizes = [64, 8], strides = [1, 1]} : vector<64x32xbf16> to vector<64x8xbf16>
    %29 = vector.extract_strided_slice %10 {offsets = [0, 8], sizes = [64, 8], strides = [1, 1]} : vector<64x32xbf16> to vector<64x8xbf16>
    %cst_6 = arith.constant dense<0.000000e+00> : vector<128x64xf32>
    %30 = tpu.matmul %27, %28, %cst_6 {dimension_numbers = #tpu.dot_dimension_numbers<[1], [1], [0], [0], [0, 0, 1, 0], [], []>} : vector<128x8xbf16>, vector<64x8xbf16>, vector<128x64xf32> -> vector<128x64xf32>
    %cst_7 = arith.constant dense<0xFF800000> : vector<64xf32>
    %31 = vector.multi_reduction <maximumf>, %30, %cst_7 [0] : vector<128x64xf32> to vector<64xf32>
    %32 = vector.shape_cast %31 : vector<64xf32> to vector<1x64xf32>
    %33 = vector.broadcast %32 : vector<1x64xf32> to vector<128x64xf32>
    %34 = arith.subf %30, %33 : vector<128x64xf32>
    %35 = math.exp %34 : vector<128x64xf32>
    %cst_8 = arith.constant dense<0.000000e+00> : vector<64xf32>
    %36 = vector.multi_reduction <add>, %35, %cst_8 [0] : vector<128x64xf32> to vector<64xf32>
    %37 = vector.shape_cast %36 : vector<64xf32> to vector<1x64xf32>
    %38 = tpu.reciprocal %37 {approx = true} : vector<1x64xf32> -> vector<1x64xf32>
    %39 = vector.broadcast %38 : vector<1x64xf32> to vector<128x64xf32>
    %40 = arith.mulf %35, %39 : vector<128x64xf32>
    %41 = arith.truncf %40 : vector<128x64xf32> to vector<128x64xbf16>
    %cst_9 = arith.constant dense<0.000000e+00> : vector<128x8xf32>
    %42 = tpu.matmul %41, %29, %cst_9 {dimension_numbers = #tpu.dot_dimension_numbers<[1], [0], [0], [1], [0, 0, 1, 1], [], []>} : vector<128x64xbf16>, vector<64x8xbf16>, vector<128x8xf32> -> vector<128x8xf32>
    %43 = vector.extract_strided_slice %6 {offsets = [0, 16], sizes = [128, 8], strides = [1, 1]} : vector<128x32xbf16> to vector<128x8xbf16>
    %44 = vector.extract_strided_slice %9 {offsets = [0, 16], sizes = [64, 8], strides = [1, 1]} : vector<64x32xbf16> to vector<64x8xbf16>
    %45 = vector.extract_strided_slice %10 {offsets = [0, 16], sizes = [64, 8], strides = [1, 1]} : vector<64x32xbf16> to vector<64x8xbf16>
    %cst_10 = arith.constant dense<0.000000e+00> : vector<128x64xf32>
    %46 = tpu.matmul %43, %44, %cst_10 {dimension_numbers = #tpu.dot_dimension_numbers<[1], [1], [0], [0], [0, 0, 1, 0], [], []>} : vector<128x8xbf16>, vector<64x8xbf16>, vector<128x64xf32> -> vector<128x64xf32>
    %cst_11 = arith.constant dense<0xFF800000> : vector<64xf32>
    %47 = vector.multi_reduction <maximumf>, %46, %cst_11 [0] : vector<128x64xf32> to vector<64xf32>
    %48 = vector.shape_cast %47 : vector<64xf32> to vector<1x64xf32>
    %49 = vector.broadcast %48 : vector<1x64xf32> to vector<128x64xf32>
    %50 = arith.subf %46, %49 : vector<128x64xf32>
    %51 = math.exp %50 : vector<128x64xf32>
    %cst_12 = arith.constant dense<0.000000e+00> : vector<64xf32>
    %52 = vector.multi_reduction <add>, %51, %cst_12 [0] : vector<128x64xf32> to vector<64xf32>
    %53 = vector.shape_cast %52 : vector<64xf32> to vector<1x64xf32>
    %54 = tpu.reciprocal %53 {approx = true} : vector<1x64xf32> -> vector<1x64xf32>
    %55 = vector.broadcast %54 : vector<1x64xf32> to vector<128x64xf32>
    %56 = arith.mulf %51, %55 : vector<128x64xf32>
    %57 = arith.truncf %56 : vector<128x64xf32> to vector<128x64xbf16>
    %cst_13 = arith.constant dense<0.000000e+00> : vector<128x8xf32>
    %58 = tpu.matmul %57, %45, %cst_13 {dimension_numbers = #tpu.dot_dimension_numbers<[1], [0], [0], [1], [0, 0, 1, 1], [], []>} : vector<128x64xbf16>, vector<64x8xbf16>, vector<128x8xf32> -> vector<128x8xf32>
    %59 = vector.extract_strided_slice %6 {offsets = [0, 24], sizes = [128, 8], strides = [1, 1]} : vector<128x32xbf16> to vector<128x8xbf16>
    %60 = vector.extract_strided_slice %9 {offsets = [0, 24], sizes = [64, 8], strides = [1, 1]} : vector<64x32xbf16> to vector<64x8xbf16>
    %61 = vector.extract_strided_slice %10 {offsets = [0, 24], sizes = [64, 8], strides = [1, 1]} : vector<64x32xbf16> to vector<64x8xbf16>
    %cst_14 = arith.constant dense<0.000000e+00> : vector<128x64xf32>
    %62 = tpu.matmul %59, %60, %cst_14 {dimension_numbers = #tpu.dot_dimension_numbers<[1], [1], [0], [0], [0, 0, 1, 0], [], []>} : vector<128x8xbf16>, vector<64x8xbf16>, vector<128x64xf32> -> vector<128x64xf32>
    %cst_15 = arith.constant dense<0xFF800000> : vector<64xf32>
    %63 = vector.multi_reduction <maximumf>, %62, %cst_15 [0] : vector<128x64xf32> to vector<64xf32>
    %64 = vector.shape_cast %63 : vector<64xf32> to vector<1x64xf32>
    %65 = vector.broadcast %64 : vector<1x64xf32> to vector<128x64xf32>
    %66 = arith.subf %62, %65 : vector<128x64xf32>
    %67 = math.exp %66 : vector<128x64xf32>
    %cst_16 = arith.constant dense<0.000000e+00> : vector<64xf32>
    %68 = vector.multi_reduction <add>, %67, %cst_16 [0] : vector<128x64xf32> to vector<64xf32>
    %69 = vector.shape_cast %68 : vector<64xf32> to vector<1x64xf32>
    %70 = tpu.reciprocal %69 {approx = true} : vector<1x64xf32> -> vector<1x64xf32>
    %71 = vector.broadcast %70 : vector<1x64xf32> to vector<128x64xf32>
    %72 = arith.mulf %67, %71 : vector<128x64xf32>
    %73 = arith.truncf %72 : vector<128x64xf32> to vector<128x64xbf16>
    %cst_17 = arith.constant dense<0.000000e+00> : vector<128x8xf32>
    %74 = tpu.matmul %73, %61, %cst_17 {dimension_numbers = #tpu.dot_dimension_numbers<[1], [0], [0], [1], [0, 0, 1, 1], [], []>} : vector<128x64xbf16>, vector<64x8xbf16>, vector<128x8xf32> -> vector<128x8xf32>
    %c0_18 = arith.constant 0 : index
    %c0_19 = arith.constant 0 : index
    %75 = vector.load %arg8[%c0_18, %c0_19] : memref<128x32xf32, #tpu.memory_space<vmem>>, vector<128x32xf32>
    %76 = tpu.concatenate %26, %42, %58, %74 in 1 : vector<128x8xf32>, vector<128x8xf32>, vector<128x8xf32>, vector<128x8xf32> -> vector<128x32xf32>
    %77 = arith.addf %75, %76 : vector<128x32xf32>
    %c0_20 = arith.constant 0 : index
    %c0_21 = arith.constant 0 : index
    %78 = vector.load %arg8[%c0_20, %c0_21] : memref<128x32xf32, #tpu.memory_space<vmem>>, vector<128x32xf32>
    tpu.vector_store %arg8[%c0_20, %c0_21], %77 {strides = array<i32>} : memref<128x32xf32, #tpu.memory_space<vmem>>, vector<128x32xf32>,
    %c1_i32 = arith.constant 1 : i32
    %79 = arith.cmpi eq, %arg0, %c1_i32 : i32
    %80 = arith.extui %79 : i1 to i32
    %c0_i32_22 = arith.constant 0 : i32
    %81 = arith.cmpi ne, %80, %c0_i32_22 : i32
    scf.if %81 {
      %c0_23 = arith.constant 0 : index
      %c0_24 = arith.constant 0 : index
      %82 = vector.load %arg8[%c0_23, %c0_24] : memref<128x32xf32, #tpu.memory_space<vmem>>, vector<128x32xf32>
      %83 = arith.truncf %82 : vector<128x32xf32> to vector<128x32xbf16>
      %c0_25 = arith.constant 0 : index
      %c0_26 = arith.constant 0 : index
      %84 = vector.load %arg4[%c0_25, %c0_26] : memref<32x32xbf16, #tpu.memory_space<vmem>>, vector<32x32xbf16>
      %cst_27 = arith.constant dense<0.000000e+00> : vector<128x32xf32>
      %85 = tpu.matmul %83, %84, %cst_27 {dimension_numbers = #tpu.dot_dimension_numbers<[1], [0], [0], [1], [0, 0, 1, 1], [], []>} : vector<128x32xbf16>, vector<32x32xbf16>, vector<128x32xf32> -> vector<128x32xf32>
      %c0_28 = arith.constant 0 : index
      %c0_29 = arith.constant 0 : index
      %86 = vector.load %arg5[%c0_28, %c0_29] : memref<1x32xf32, #tpu.memory_space<vmem>>, vector<1x32xf32>
      %87 = vector.broadcast %86 : vector<1x32xf32> to vector<128x32xf32>
      %88 = arith.addf %85, %87 : vector<128x32xf32>
      %c0_30 = arith.constant 0 : index
      %c0_31 = arith.constant 0 : index
      %89 = vector.load %arg6[%c0_30, %c0_31] : memref<128x32xf32, #tpu.memory_space<vmem>>, vector<128x32xf32>
      tpu.vector_store %arg6[%c0_30, %c0_31], %88 {strides = array<i32>} : memref<128x32xf32, #tpu.memory_space<vmem>>, vector<128x32xf32>,
    } else {
    }
    return
  }
  func.func @transform_0(%arg0: i32) -> (i32, i32) {
    %c0_i32 = arith.constant 0 : i32
    %c0_i32_0 = arith.constant 0 : i32
    %c0_i32_1 = arith.constant 0 : i32
    return %c0_i32, %c0_i32_0 : i32, i32
  }
  func.func @transform_1(%arg0: i32) -> (i32, i32) {
    %c0_i32 = arith.constant 0 : i32
    %c0_i32_0 = arith.constant 0 : i32
    %c0_i32_1 = arith.constant 0 : i32
    return %c0_i32, %c0_i32_0 : i32, i32
  }
  func.func @transform_2(%arg0: i32) -> (i32, i32) {
    %c0_i32 = arith.constant 0 : i32
    %c0_i32_0 = arith.constant 0 : i32
    %c0_i32_1 = arith.constant 0 : i32
    return %c0_i32, %c0_i32_0 : i32, i32
  }
  func.func @transform_3(%arg0: i32) -> (i32, i32) {
    %c0_i32 = arith.constant 0 : i32
    %c0_i32_0 = arith.constant 0 : i32
    %c0_i32_1 = arith.constant 0 : i32
    return %c0_i32, %c0_i32_0 : i32, i32
  }
  func.func @transform_4(%arg0: i32) -> (i32, i32) {
    %c0_i32 = arith.constant 0 : i32
    %c0_i32_0 = arith.constant 0 : i32
    %c0_i32_1 = arith.constant 0 : i32
    return %c0_i32, %c0_i32_0 : i32, i32
  }
  func.func @transform_5(%arg0: i32) -> (i32, i32) {
    %c0_i32 = arith.constant 0 : i32
    %c0_i32_0 = arith.constant 0 : i32
    %c0_i32_1 = arith.constant 0 : i32
    return %c0_i32, %c0_i32_0 : i32, i32
  }
}

</mosaic_0001>

<bundles_post_ra>
// kernel: tpu_custom_call.1
= control target key start
LH: loop header
LB: loop body
LE: loop exit
PB: predicated region body
PF: predicated region fallthrough
CT: control target
= control target key end

     0   :  { %s3576_s18 = smov 0   ;;  %s4804_s0 = inlined_call_operand.vmem [shape: bf16[128,32], index: 0, kind: input, shape index: {}]   ;;  %s4805_s1 = inlined_call_operand.vmem [shape: bf16[32,96], index: 1, kind: input, shape index: {}]   ;;  %s4806_s2 = inlined_call_operand.vmem [shape: f32[1,96], index: 2, kind: input, shape index: {}]   ;;  %s4807_s3 = inlined_call_operand.vmem [shape: bf16[32,32], index: 3, kind: input, shape index: {}]   ;;  %s4808_s4 = inlined_call_operand.vmem [shape: f32[1,32], index: 4, kind: input, shape index: {}]   ;;  %s4809_s5 = inlined_call_operand.vmem [shape: f32[128,32], index: 5, kind: output, shape index: {}]  }
   0x1 LB: > { %s3582_s19 = sadd.s32 4294967295, %s3529_s18   ;;  %p2815_p0 = scmp.ge.s32.totalorder %s3529_s18, 1  ;;  %s3529_s18 = sphi %s3576_s18, %s15_s18  }
   0x2   : > { %p172_p1 = scmp.lt.s32.totalorder %s3529_s18, 3 }
   0x4   : > { %p173_p2 = pnand %p2815_p0, %p172_p1 }
   0x6   : > { %176 = sbr.rel (%p173_p2) target bundleno = 1702 (0x6a6), region = 40 }
   0xb   : > { %p2816_p3 = scmp.ne.s32.totalorder %s3582_s19, 0 }
   0xd   : > { %194 = sbr.rel (%p2816_p3) target bundleno = 239 (0xef), region = 44 }
  0x12   : > { %v3363_v0 = vld [vmem:[%s4805_s1 + $0x8] sm:$0xff]   ;;  %vm274_vm0 = vcmask 261120   ;;  %v3364_v1 = vld [vmem:[%s4805_s1] sm:$0xff]   ;;  %v3531_v3 = vmov 0.0   ;;  %v3369_v7 = vld [vmem:[%s4804_s0 + $0x10] sm:$0xff]   ;;  %vm460_vm1 = vcmask 781312  }
  0x13   : > { %3076 = vmatprep.subr.bf16.mxu0 %v3363_v0  ;;  %3308 = vmatprep.subr.bf16.mxu1 %v3363_v0  ;;  %v3365_v2 = vld [vmem:[%s4804_s0] sm:$0xff]   ;;  %477 = vst.msk [vmem:[#allocation3] sm:$0xff] %vm274_vm0, %v3531_v3  ;;  %478 = vst.msk [vmem:[#allocation3 + $0x8] sm:$0xff] %vm274_vm0, %v3531_v3  ;;  %v3367_v5 = vld [vmem:[%s4804_s0 + $0x8] sm:$0xff]  }
  0x14   : > { %479 = vst.msk [vmem:[#allocation3 + $0x10] sm:$0xff] %vm274_vm0, %v3531_v3  ;;  %480 = vst.msk [vmem:[#allocation3 + $0x18] sm:$0xff] %vm274_vm0, %v3531_v3  ;;  %3077 = vmatpush3.bf16.msra.mxu0 %v3363_v0  ;;  %3310 = vmatpush3.bf16.msra.mxu1 %v3363_v0  ;;  %v3366_v4 = vld [vmem:[%s4804_s0 + $0x20] sm:$0xff]   ;;  %v3368_v6 = vld [vmem:[%s4804_s0 + $0x28] sm:$0xff]  }
  0x15   : > { %481 = vst.msk [vmem:[#allocation3 + $0x20] sm:$0xff] %vm274_vm0, %v3531_v3  ;;  %482 = vst.msk [vmem:[#allocation3 + $0x28] sm:$0xff] %vm274_vm0, %v3531_v3  ;;  %3078 = vmatprep.subr.bf16.mxu0 %v3364_v1  ;;  %3309 = vmatprep.subr.bf16.mxu1 %v3364_v1  ;;  %v3370_v8 = vld [vmem:[%s4804_s0 + $0x30] sm:$0xff]   ;;  %v3371_v9 = vld [vmem:[%s4804_s0 + $0x18] sm:$0xff]  }
  0x16   : > { %483 = vst.msk [vmem:[#allocation3 + $0x30] sm:$0xff] %vm274_vm0, %v3531_v3  ;;  %484 = vst.msk [vmem:[#allocation3 + $0x38] sm:$0xff] %vm274_vm0, %v3531_v3  ;;  %3080 = vmatprep.mubr.msk.bf16.mxu0 %vm274_vm0, %v3365_v2  ;;  %3088 = vmatprep.mubr.msk.bf16.mxu1 %vm274_vm0, %v3366_v4  ;;  %v3372_v10 = vld [vmem:[%s4804_s0 + $0x38] sm:$0xff]   ;;  %v2817_v11 = vld [vmem:[%s4806_s2] ss:$0 sm:$0xff] }
  0x17   : > { %485 = vst.msk [vmem:[#allocation3 + $0x40] sm:$0xff] %vm274_vm0, %v3531_v3  ;;  %486 = vst.msk [vmem:[#allocation3 + $0x48] sm:$0xff] %vm274_vm0, %v3531_v3 }
  0x18   : > { %487 = vst.msk [vmem:[#allocation3 + $0x50] sm:$0xff] %vm274_vm0, %v3531_v3  ;;  %488 = vst.msk [vmem:[#allocation3 + $0x58] sm:$0xff] %vm274_vm0, %v3531_v3  ;;  %3079 = vmatpush3.bf16.msra.mxu0 %v3364_v1  ;;  %3311 = vmatpush3.bf16.msra.mxu1 %v3364_v1 }
  0x19   : > { %489 = vst.msk [vmem:[#allocation3 + $0x60] sm:$0xff] %vm274_vm0, %v3531_v3  ;;  %490 = vst.msk [vmem:[#allocation3 + $0x68] sm:$0xff] %vm274_vm0, %v3531_v3 }
  0x1a   : > { %491 = vst.msk [vmem:[#allocation3 + $0x70] sm:$0xff] %vm274_vm0, %v3531_v3  ;;  %492 = vst.msk [vmem:[#allocation3 + $0x78] sm:$0xff] %vm274_vm0, %v3531_v3 }
  0x1b   : > { %3081 = vmatmul.mubr.msk.bf16.vlgmr.msra.gmra.mxu0 %vm274_vm0, %v3367_v5  ;;  %3089 = vmatmul.mubr.msk.bf16.vlgmr.msra.gmra.mxu1 %vm274_vm0, %v3368_v6 }
  0x1c   : > { %3084 = vmatprep.mubr.msk.bf16.mxu0 %vm274_vm0, %v3369_v7  ;;  %3092 = vmatprep.mubr.msk.bf16.mxu1 %vm274_vm0, %v3370_v8 }
  0x23   : > { %3085 = vmatmul.mubr.msk.bf16.gmra.mxu0 %vm274_vm0, %v3371_v9  ;;  %3093 = vmatmul.mubr.msk.bf16.gmra.mxu1 %vm274_vm0, %v3372_v10 }
  0xdb   : > { %v3082_v12 = vpop.f32.mrf.mxu0  ;;  %v3090_v13 = vpop.f32.mrf.mxu1 }
  0xdc   : > { %v342_v14 = vadd.f32 %v3082_v12, %v2817_v11  ;;  %v374_v15 = vadd.f32 %v3090_v13, %v2817_v11 }
  0xdd   : > { %v333_v16 = vpop.f32.mrf.mxu0  ;;  %v365_v17 = vpop.f32.mrf.mxu1 }
  0xde   : > { %v2946_v18 = vpack.c.bf16 %v342_v14, %v342_v14  ;;  %v2954_v19 = vpack.c.bf16 %v374_v15, %v374_v15  ;;  %v334_v20 = vadd.f32 %v2817_v11, %v333_v16  ;;  %v366_v21 = vadd.f32 %v2817_v11, %v365_v17 }
  0xdf   : > { %v3083_v22 = vpop.f32.mrf.mxu0  ;;  %v3091_v23 = vpop.f32.mrf.mxu1 }
  0xe0   : > { %463 = vst.msk [vmem:[#allocation2 + $0x8] sm:$0xf] %vm460_vm1, %v2946_v18  ;;  %471 = vst.msk [vmem:[#allocation2 + $0x28] sm:$0xf] %vm460_vm1, %v2954_v19  ;;  %v2944_v24 = vpack.c.bf16 %v334_v20, %v334_v20  ;;  %v2952_v25 = vpack.c.bf16 %v366_v21, %v366_v21  ;;  %v345_v26 = vadd.f32 %v3083_v22, %v2817_v11 }
  0xe1   : > { %v377_v27 = vadd.f32 %v3091_v23, %v2817_v11  ;;  %v336_v28 = vpop.f32.mrf.mxu0  ;;  %v368_v29 = vpop.f32.mrf.mxu1 }
  0xe2   : > { %461 = vst.msk [vmem:[#allocation2] sm:$0xf] %vm460_vm1, %v2944_v24  ;;  %469 = vst.msk [vmem:[#allocation2 + $0x20] sm:$0xf] %vm460_vm1, %v2952_v25  ;;  %v2947_v30 = vpack.c.bf16 %v345_v26, %v345_v26  ;;  %v337_v32 = vadd.f32 %v2817_v11, %v336_v28  ;;  %v369_v33 = vadd.f32 %v2817_v11, %v368_v29 }
  0xe3   : > { %v2955_v31 = vpack.c.bf16 %v377_v27, %v377_v27  ;;  %v3086_v34 = vpop.f32.mrf.mxu0  ;;  %v3094_v35 = vpop.f32.mrf.mxu1 }
  0xe4   : > { %464 = vst.msk [vmem:[#allocation2 + $0xc] sm:$0xf] %vm460_vm1, %v2947_v30  ;;  %v2945_v36 = vpack.c.bf16 %v337_v32, %v337_v32  ;;  %v2953_v37 = vpack.c.bf16 %v369_v33, %v369_v33  ;;  %v358_v38 = vadd.f32 %v3086_v34, %v2817_v11  ;;  %v390_v39 = vadd.f32 %v3094_v35, %v2817_v11 }
  0xe5   : > { %472 = vst.msk [vmem:[#allocation2 + $0x2c] sm:$0xf] %vm460_vm1, %v2955_v31  ;;  %v349_v40 = vpop.f32.mrf.mxu0  ;;  %v381_v41 = vpop.f32.mrf.mxu1 }
  0xe6   : > { %462 = vst.msk [vmem:[#allocation2 + $0x4] sm:$0xf] %vm460_vm1, %v2945_v36  ;;  %470 = vst.msk [vmem:[#allocation2 + $0x24] sm:$0xf] %vm460_vm1, %v2953_v37  ;;  %v2950_v42 = vpack.c.bf16 %v358_v38, %v358_v38  ;;  %v2958_v43 = vpack.c.bf16 %v390_v39, %v390_v39  ;;  %v350_v44 = vadd.f32 %v2817_v11, %v349_v40 }
  0xe7   : > { %v382_v45 = vadd.f32 %v2817_v11, %v381_v41  ;;  %v3087_v46 = vpop.f32.mrf.mxu0  ;;  %v3095_v47 = vpop.f32.mrf.mxu1 }
  0xe8   : > { %467 = vst.msk [vmem:[#allocation2 + $0x18] sm:$0xf] %vm460_vm1, %v2950_v42  ;;  %475 = vst.msk [vmem:[#allocation2 + $0x38] sm:$0xf] %vm460_vm1, %v2958_v43  ;;  %v2948_v48 = vpack.c.bf16 %v350_v44, %v350_v44  ;;  %v361_v50 = vadd.f32 %v3087_v46, %v2817_v11  ;;  %v393_v51 = vadd.f32 %v3095_v47, %v2817_v11 }
  0xe9   : > { %v2956_v49 = vpack.c.bf16 %v382_v45, %v382_v45  ;;  %v352_v52 = vpop.f32.mrf.mxu0  ;;  %v384_v53 = vpop.f32.mrf.mxu1 }
  0xea   : > { %465 = vst.msk [vmem:[#allocation2 + $0x10] sm:$0xf] %vm460_vm1, %v2948_v48  ;;  %v2951_v54 = vpack.c.bf16 %v361_v50, %v361_v50  ;;  %v2959_v55 = vpack.c.bf16 %v393_v51, %v393_v51  ;;  %v353_v56 = vadd.f32 %v2817_v11, %v352_v52  ;;  %v385_v57 = vadd.f32 %v2817_v11, %v384_v53 }
  0xeb   : > { %473 = vst.msk [vmem:[#allocation2 + $0x30] sm:$0xf] %vm460_vm1, %v2956_v49 }
  0xec   : > { %468 = vst.msk [vmem:[#allocation2 + $0x1c] sm:$0xf] %vm460_vm1, %v2951_v54  ;;  %476 = vst.msk [vmem:[#allocation2 + $0x3c] sm:$0xf] %vm460_vm1, %v2959_v55  ;;  %v2949_v58 = vpack.c.bf16 %v353_v56, %v353_v56  ;;  %v2957_v59 = vpack.c.bf16 %v385_v57, %v385_v57 }
  0xee   : > { %466 = vst.msk [vmem:[#allocation2 + $0x14] sm:$0xf] %vm460_vm1, %v2949_v58  ;;  %474 = vst.msk [vmem:[#allocation2 + $0x34] sm:$0xf] %vm460_vm1, %v2957_v59 }
  0xef PF: > { %s2852_s17 = sshll.u32 %s3582_s19, 6  ;;  %s3532_s23 = smov 96   ;;  %v3673_v0 = vld [vmem:[#allocation2] sm:$0xff]   ;;  %vm590_vm2 = vcmask 64512   ;;  %v3378_v9 = vld [vmem:[#allocation2 + $0x8] sm:$0xff]   ;;  %vm724_vm3 = vcmask 523264  }
  0xf0   : > { %s510_s20 = sshra.s32 %s2852_s17, 3  ;;  %3104 = vmatprep.mubr.msk.bf16.mxu0 %vm590_vm2, %v3673_v0  ;;  %s3533_s24 = smov 64   ;;  %v3381_v12 = vld [vmem:[#allocation2 + $0x20] sm:$0xff]   ;;  %v3382_v13 = vld [vmem:[#allocation2 + $0x28] sm:$0xff]   ;;  %vm2540_vm4 = vcmask 130048   ;;  %vm2557_vm5 = vcmask 195584  }
  0xf1   : > { %s2853_s21 = sshll.u32 %s510_s20, 2  ;;  %s3534_s25 = smov 88   ;;  %vm2590_vm6 = vcmask 261120  }
  0xf2   : > { %s513_s22 = scalar_lea.vmem [#allocation2], %s2853_s21  ;;  %s3535_s26 = smov 120  }
  0xf3   : > { %v3380_v11 = vld [vmem:[#allocation2 + $0x18] sm:$0xff]   ;;  %s3536_s27 = smov 80   ;;  %s3537_s28 = smov 112  }
  0xf4   : > { %v3384_v15 = vld [vmem:[#allocation2 + $0x38] sm:$0xff]   ;;  %s3538_s29 = smov 72   ;;  %s3539_s30 = smov 104  }
  0xf5   : > { %v3661_v60 = vld [vmem:[%s513_s22 + $0x18] sm:$0xff]   ;;  %v3663_v61 = vld [vmem:[%s513_s22 + $0x10] sm:$0xff]   ;;  %v3666_v62 = vld [vmem:[%s513_s22 + $0x8] sm:$0xff]   ;;  %s3540_s6 = smov 56   ;;  %s3541_s7 = smov 48  }
  0xf6   : > { %588 = vrot.lane.b32.xlu0 %v3661_v60, %s3532_s23  ;;  %v3668_v63 = vld [vmem:[%s513_s22] sm:$0xff]   ;;  %584 = vrot.lane.b32.xlu1 %v3666_v62, %s3532_s23  ;;  %v3379_v10 = vld [vmem:[#allocation2 + $0x10] sm:$0xff]   ;;  %s3542_s8 = smov 40   ;;  %s3543_s9 = smov 8  }
  0xf7   : > { %v3383_v14 = vld [vmem:[#allocation2 + $0x30] sm:$0xff]   ;;  %s3544_s10 = smov 16   ;;  %s3545_s11 = smov 24  }
  0xf8   : > { %p2930_p4 = scmp.ne.s32.totalorder %s3582_s19, 1 }
  0xfa   : > { %586 = vrot.lane.b32.xlu0 %v3663_v61, %s3532_s23  ;;  %582 = vrot.lane.b32.xlu1 %v3668_v63, %s3532_s23 }
  0xfe   : > { %878 = vrot.lane.b32.xlu0 %v3661_v60, %s3533_s24  ;;  %876 = vrot.lane.b32.xlu1 %v3663_v61, %s3533_s24 }
 0x102   : > { %874 = vrot.lane.b32.xlu0 %v3666_v62, %s3533_s24  ;;  %872 = vrot.lane.b32.xlu1 %v3668_v63, %s3533_s24 }
 0x106   : > { %1027 = vrot.lane.b32.xlu0 %v3661_v60, %s3534_s25  ;;  %1025 = vrot.lane.b32.xlu1 %v3663_v61, %s3534_s25 }
 0x10a   : > { %1023 = vrot.lane.b32.xlu0 %v3666_v62, %s3534_s25  ;;  %1021 = vrot.lane.b32.xlu1 %v3668_v63, %s3534_s25 }
 0x10e   : > { %1005 = vrot.lane.b32.xlu0 %v3673_v0, %s3535_s26  ;;  %1007 = vrot.lane.b32.xlu1 %v3378_v9, %s3535_s26 }
 0x112   : > { %1464 = vrot.lane.b32.xlu0 %v3661_v60, %s3536_s27  ;;  %1009 = vrot.lane.b32.xlu1 %v3379_v10, %s3535_s26 }
 0x116   : > { %1011 = vrot.lane.b32.xlu0 %v3380_v11, %s3535_s26  ;;  %1462 = vrot.lane.b32.xlu1 %v3663_v61, %s3536_s27 }
 0x11a   : > { %1013 = vrot.lane.b32.xlu0 %v3381_v12, %s3535_s26  ;;  %1015 = vrot.lane.b32.xlu1 %v3382_v13, %s3535_s26 }
 0x11e   : > { %1460 = vrot.lane.b32.xlu0 %v3666_v62, %s3536_s27  ;;  %1017 = vrot.lane.b32.xlu1 %v3383_v14, %s3535_s26 }
 0x122   : > { %1019 = vrot.lane.b32.xlu0 %v3384_v15, %s3535_s26  ;;  %1458 = vrot.lane.b32.xlu1 %v3668_v63, %s3536_s27 }
 0x126   : > { %1442 = vrot.lane.b32.xlu0 %v3673_v0, %s3537_s28  ;;  %1444 = vrot.lane.b32.xlu1 %v3378_v9, %s3537_s28 }
 0x12a   : > { %1901 = vrot.lane.b32.xlu0 %v3661_v60, %s3538_s29  ;;  %1446 = vrot.lane.b32.xlu1 %v3379_v10, %s3537_s28 }
 0x12e   : > { %1448 = vrot.lane.b32.xlu0 %v3380_v11, %s3537_s28  ;;  %1899 = vrot.lane.b32.xlu1 %v3663_v61, %s3538_s29 }
 0x132   : > { %1450 = vrot.lane.b32.xlu0 %v3381_v12, %s3537_s28  ;;  %1452 = vrot.lane.b32.xlu1 %v3382_v13, %s3537_s28 }
 0x136   : > { %1897 = vrot.lane.b32.xlu0 %v3666_v62, %s3538_s29  ;;  %1454 = vrot.lane.b32.xlu1 %v3383_v14, %s3537_s28 }
 0x13a   : > { %1895 = vrot.lane.b32.xlu1 %v3668_v63, %s3538_s29  ;;  %1456 = vrot.lane.b32.xlu0 %v3384_v15, %s3537_s28 }
 0x13e   : > { %1879 = vrot.lane.b32.xlu0 %v3673_v0, %s3539_s30  ;;  %1881 = vrot.lane.b32.xlu1 %v3378_v9, %s3539_s30 }
 0x142   : > { %1883 = vrot.lane.b32.xlu0 %v3379_v10, %s3539_s30  ;;  %1885 = vrot.lane.b32.xlu1 %v3380_v11, %s3539_s30 }
 0x146   : > { %1887 = vrot.lane.b32.xlu0 %v3381_v12, %s3539_s30  ;;  %1889 = vrot.lane.b32.xlu1 %v3382_v13, %s3539_s30 }
 0x14a   : > { %1891 = vrot.lane.b32.xlu0 %v3383_v14, %s3539_s30  ;;  %1893 = vrot.lane.b32.xlu1 %v3384_v15, %s3539_s30 }
 0x14e   : > { %1315 = vrot.lane.b32.xlu0 %v3661_v60, %s3540_s6  ;;  %1313 = vrot.lane.b32.xlu1 %v3663_v61, %s3540_s6 }
 0x152   : > { %1311 = vrot.lane.b32.xlu0 %v3666_v62, %s3540_s6  ;;  %1309 = vrot.lane.b32.xlu1 %v3668_v63, %s3540_s6 }
 0x156   : > { %1752 = vrot.lane.b32.xlu0 %v3661_v60, %s3541_s7  ;;  %1750 = vrot.lane.b32.xlu1 %v3663_v61, %s3541_s7 }
 0x15a   : > { %1748 = vrot.lane.b32.xlu0 %v3666_v62, %s3541_s7  ;;  %1746 = vrot.lane.b32.xlu1 %v3668_v63, %s3541_s7 }
 0x15e   : > { %2189 = vrot.lane.b32.xlu0 %v3661_v60, %s3542_s8  ;;  %2187 = vrot.lane.b32.xlu1 %v3663_v61, %s3542_s8 }
 0x162   : > { %2185 = vrot.lane.b32.xlu0 %v3666_v62, %s3542_s8  ;;  %2183 = vrot.lane.b32.xlu1 %v3668_v63, %s3542_s8 }
 0x168   : > { %v589_v1 = vpop.permute.xlu0 %588  ;;  %v585_v5 = vpop.permute.xlu1 %584 }
 0x169   : > { %3324 = vmatprep.subr.msk.bf16.mxu0 %vm590_vm2, %v589_v1  ;;  %v625_v2 = vsel %vm590_vm2, %v589_v1, 0  ;;  %v619_v6 = vsel %vm590_vm2, %v585_v5, 0 }
 0x16a   : > { %3097 = vmatpush3.bf16.xpose.msra.mxu0 %v625_v2 }
 0x16c   : > { %v587_v3 = vpop.permute.xlu0 %586  ;;  %v583_v7 = vpop.permute.xlu1 %582 }
 0x16d   : > { %3325 = vmatprep.subr.msk.bf16.mxu0 %vm590_vm2, %v587_v3  ;;  %v622_v4 = vsel %vm590_vm2, %v587_v3, 0  ;;  %v616_v8 = vsel %vm590_vm2, %v583_v7, 0 }
 0x170   : > { %v879_v16 = vpop.permute.xlu0 %878  ;;  %v877_v17 = vpop.permute.xlu1 %876 }
 0x171   : > { %3120 = vmatprep.subr.bf16.mxu1 %v879_v16 }
 0x172   : > { %3099 = vmatpush3.bf16.xpose.msra.mxu0 %v622_v4  ;;  %3121 = vmatpush3.bf16.msra.mxu1 %v879_v16 }
 0x173   : > { %3326 = vmatprep.subr.msk.bf16.mxu0 %vm590_vm2, %v585_v5  ;;  %3122 = vmatprep.subr.bf16.mxu1 %v877_v17 }
 0x174   : > { %v875_v18 = vpop.permute.xlu0 %874  ;;  %v873_v19 = vpop.permute.xlu1 %872 }
 0x176   : > { %3123 = vmatpush3.bf16.msra.mxu1 %v877_v17 }
 0x177   : > { %3124 = vmatprep.subr.bf16.mxu1 %v875_v18 }
 0x178   : > { %v3713_v21 = vpop.permute.xlu0 %1027 }
 0x17a   : > { %3101 = vmatpush3.bf16.xpose.msra.mxu0 %v619_v6  ;;  %3125 = vmatpush3.bf16.msra.mxu1 %v875_v18 }
 0x17b   : > { %3327 = vmatprep.subr.msk.bf16.mxu0 %vm590_vm2, %v583_v7  ;;  %3126 = vmatprep.subr.bf16.mxu1 %v873_v19 }
 0x17e   : > { %3127 = vmatpush3.bf16.msra.mxu1 %v873_v19 }
 0x17f   : > { %3328 = vmatprep.subr.msk.bf16.mxu1 %vm590_vm2, %v3713_v21 }
 0x182   : > { %3103 = vmatpush3.bf16.xpose.msra.mxu0 %v616_v8 }
 0x189   : > { %3105 = vmatmul.mubr.msk.bf16.vlgmr.msra.gmra.mxu0 %vm590_vm2, %v3378_v9 }
 0x18a   : > { %3108 = vmatprep.mubr.msk.bf16.mxu0 %vm590_vm2, %v3379_v10 }
 0x191   : > { %3109 = vmatmul.mubr.msk.bf16.gmra.mxu0 %vm590_vm2, %v3380_v11 }
 0x192   : > { %3112 = vmatprep.mubr.msk.bf16.mxu0 %vm590_vm2, %v3381_v12 }
 0x199   : > { %3113 = vmatmul.mubr.msk.bf16.gmra.mxu0 %vm590_vm2, %v3382_v13 }
 0x19a   : > { %3116 = vmatprep.mubr.msk.bf16.mxu0 %vm590_vm2, %v3383_v14 }
 0x1a1   : > { %3117 = vmatmul.mubr.msk.bf16.gmra.mxu0 %vm590_vm2, %v3384_v15 }
 0x249   : > { %v3711_v20 = vpop.f32.mrf.mxu0 }
 0x24a   : > { %v727_v40 = vsel %vm724_vm3, %v3711_v20, -inf }
 0x24b   : > { %v661_v22 = vpop.f32.mrf.mxu0 }
 0x24c   : > { %v725_v41 = vsel %vm724_vm3, %v661_v22, -inf }
 0x24d   : > { %v3107_v23 = vpop.f32.mrf.mxu0 }
 0x24e   : > { %v728_v34 = vsel %vm724_vm3, %v3107_v23, -inf }
 0x24f   : > { %v664_v24 = vpop.f32.mrf.mxu0 }
 0x250   : > { %v726_v44 = vsel %vm724_vm3, %v664_v24, -inf }
 0x251   : > { %v3717_v25 = vpop.f32.mrf.mxu0 }
 0x252   : > { %v733_v36 = vsel %vm724_vm3, %v3717_v25, -inf }
 0x253   : > { %v677_v26 = vpop.f32.mrf.mxu0  ;;  %v734_v48 = vmax.f32 %v727_v40, %v733_v36 }
 0x254   : > { %v729_v37 = vsel %vm724_vm3, %v677_v26, -inf }
 0x255   : > { %v3719_v27 = vpop.f32.mrf.mxu0  ;;  %v730_v49 = vmax.f32 %v725_v41, %v729_v37 }
 0x256   : > { %v735_v33 = vsel %vm724_vm3, %v3719_v27, -inf }
 0x257   : > { %v3721_v28 = vpop.f32.mrf.mxu0  ;;  %v736_v42 = vmax.f32 %v728_v34, %v735_v33 }
 0x258   : > { %v731_v38 = vsel %vm724_vm3, %v3721_v28, -inf }
 0x259   : > { %v3723_v29 = vpop.f32.mrf.mxu0  ;;  %v732_v50 = vmax.f32 %v726_v44, %v731_v38 }
 0x25a   : > { %v741_v45 = vsel %vm724_vm3, %v3723_v29, -inf }
 0x25b   : > { %v3725_v30 = vpop.f32.mrf.mxu0  ;;  %v742_v56 = vmax.f32 %v734_v48, %v741_v45 }
 0x25c   : > { %v737_v46 = vsel %vm724_vm3, %v3725_v30, -inf }
 0x25d   : > { %v3727_v31 = vpop.f32.mrf.mxu0  ;;  %v738_v57 = vmax.f32 %v730_v49, %v737_v46 }
 0x25e   : > { %v743_v39 = vsel %vm724_vm3, %v3727_v31, -inf }
 0x25f   : > { %v3729_v32 = vpop.f32.mrf.mxu0  ;;  %v744_v51 = vmax.f32 %v736_v42, %v743_v39 }
 0x260   : > { %v739_v47 = vsel %vm724_vm3, %v3729_v32, -inf }
 0x261   : > { %v3734_v35 = vpop.f32.mrf.mxu0  ;;  %v740_v58 = vmax.f32 %v732_v50, %v739_v47 }
 0x262   : > { %v749_v53 = vsel %vm724_vm3, %v3734_v35, -inf }
 0x263   : > { %v3746_v43 = vpop.f32.mrf.mxu0  ;;  %v750_v2 = vmax.f32 %v742_v56, %v749_v53 }
 0x264   : > { %v745_v54 = vsel %vm724_vm3, %v3746_v43, -inf }
 0x265   : > { %v3755_v52 = vpop.f32.mrf.mxu0  ;;  %v746_v3 = vmax.f32 %v738_v57, %v745_v54 }
 0x266   : > { %v751_v55 = vsel %vm724_vm3, %v3755_v52, -inf }
 0x267   : > { %v752_v59 = vmax.f32 %v744_v51, %v751_v55  ;;  %v3763_v0 = vpop.f32.mrf.mxu0 }
 0x268   : > { %v747_v1 = vsel %vm724_vm3, %v3763_v0, -inf }
 0x269   : > { %v748_v4 = vmax.f32 %v740_v58, %v747_v1  ;;  %v754_v5 = vmax.f32 %v750_v2, %v752_v59 }
 0x26b   : > { %v753_v6 = vmax.f32 %v746_v3, %v748_v4 }
 0x26d   : > { %v755_v7 = vmax.f32 %v753_v6, %v754_v5 }
 0x26f   : > { %v756_v8 = vrot.slane %v755_v7, 4 }
 0x271   : > { %v757_v9 = vmax.f32 %v755_v7, %v756_v8 }
 0x273   : > { %v758_v10 = vrot.slane %v757_v9, 2 }
 0x275   : > { %v759_v11 = vmax.f32 %v757_v9, %v758_v10 }
 0x277   : > { %v760_v12 = vrot.slane %v759_v11, 1 }
 0x279   : > { %v761_v13 = vmax.f32 %v759_v11, %v760_v12 }
 0x27b   : > { %v762_v14 = vsub.f32 %v661_v22, %v761_v13  ;;  %v763_v15 = vsub.f32 %v664_v24, %v761_v13  ;;  %v764_v16 = vsub.f32 %v3711_v20, %v761_v13  ;;  %v765_v17 = vsub.f32 %v3107_v23, %v761_v13 }
 0x27c   : > { %v766_v18 = vsub.f32 %v677_v26, %v761_v13  ;;  %v767_v34 = vsub.f32 %v3721_v28, %v761_v13  ;;  %v768_v38 = vsub.f32 %v3717_v25, %v761_v13  ;;  %v769_v40 = vsub.f32 %v3719_v27, %v761_v13 }
 0x27d   : > { %v778_v19 = vmul.f32 1.442695, %v762_v14  ;;  %v780_v33 = vmul.f32 1.442695, %v763_v15  ;;  %v782_v36 = vmul.f32 1.442695, %v764_v16  ;;  %v770_v20 = vsub.f32 %v3725_v30, %v761_v13 }
 0x27e   : > { %v784_v37 = vmul.f32 1.442695, %v765_v17  ;;  %v786_v39 = vmul.f32 1.442695, %v766_v18  ;;  %v788_v22 = vmul.f32 1.442695, %v767_v34  ;;  %v771_v24 = vsub.f32 %v3729_v32, %v761_v13 }
 0x27f   : > { %3385 = vpow2.f32 %v778_v19  ;;  %v790_v23 = vmul.f32 1.442695, %v768_v38  ;;  %v792_v26 = vmul.f32 1.442695, %v769_v40  ;;  %v772_v28 = vsub.f32 %v3723_v29, %v761_v13 }
 0x280   : > { %3387 = vpow2.f32 %v780_v33  ;;  %v794_v41 = vmul.f32 1.442695, %v770_v20  ;;  %v773_v25 = vsub.f32 %v3727_v31, %v761_v13  ;;  %v796_v42 = vmul.f32 1.442695, %v771_v24 }
 0x281   : > { %3389 = vpow2.f32 %v782_v36  ;;  %v774_v27 = vsub.f32 %v3746_v43, %v761_v13  ;;  %v798_v30 = vmul.f32 1.442695, %v772_v28  ;;  %v775_v29 = vsub.f32 %v3763_v0, %v761_v13 }
 0x282   : > { %3391 = vpow2.f32 %v784_v37  ;;  %v800_v47 = vmul.f32 1.442695, %v773_v25  ;;  %v776_v43 = vsub.f32 %v3734_v35, %v761_v13  ;;  %v777_v56 = vsub.f32 %v3755_v52, %v761_v13 }
 0x283   : > { %3393 = vpow2.f32 %v786_v39  ;;  %v802_v50 = vmul.f32 1.442695, %v774_v27  ;;  %v804_v55 = vmul.f32 1.442695, %v775_v29 }
 0x284   : > { %3395 = vpow2.f32 %v788_v22  ;;  %v806_v0 = vmul.f32 1.442695, %v776_v43  ;;  %v808_v3 = vmul.f32 1.442695, %v777_v56 }
 0x285   : > { %3397 = vpow2.f32 %v790_v23 }
 0x286   : > { %3399 = vpow2.f32 %v792_v26 }
 0x287   : > { %3401 = vpow2.f32 %v794_v41 }
 0x288   : > { %3403 = vpow2.f32 %v796_v42 }
 0x289   : > { %3405 = vpow2.f32 %v798_v30 }
 0x28a   : > { %3407 = vpow2.f32 %v800_v47 }
 0x28b   : > { %3409 = vpow2.f32 %v802_v50 }
 0x28c   : > { %v3775_v44 = vpop.eup %3385  ;;  %3411 = vpow2.f32 %v804_v55 }
 0x28d   : > { %v3778_v45 = vpop.eup %3387  ;;  %v810_v32 = vsel %vm724_vm3, %v3775_v44, 0.0  ;;  %3413 = vpow2.f32 %v806_v0 }
 0x28e   : > { %v3782_v46 = vpop.eup %3389  ;;  %v811_v31 = vsel %vm724_vm3, %v3778_v45, 0.0  ;;  %3415 = vpow2.f32 %v808_v3 }
 0x28f   : > { %v3787_v48 = vpop.eup %3391  ;;  %v812_v49 = vadd.f32 %v811_v31, %v810_v32  ;;  %v813_v51 = vsel %vm724_vm3, %v3782_v46, 0.0  ;;  %v1063_v31 = vsel %vm590_vm2, %v3713_v21, 0 }
 0x290   : > { %v3394_v53 = vpop.eup %3393  ;;  %v815_v57 = vsel %vm724_vm3, %v3787_v48, 0.0 }
 0x291   : > { %v814_v54 = vadd.f32 %v813_v51, %v812_v49  ;;  %v3396_v58 = vpop.eup %3395  ;;  %v817_v35 = vsel %vm724_vm3, %v3394_v53, 0.0 }
 0x292   : > { %v3398_v1 = vpop.eup %3397  ;;  %v819_v4 = vsel %vm724_vm3, %v3396_v58, 0.0 }
 0x293   : > { %v816_v59 = vadd.f32 %v815_v57, %v814_v54  ;;  %v3400_v5 = vpop.eup %3399  ;;  %v821_v52 = vsel %vm724_vm3, %v3398_v1, 0.0 }
 0x294   : > { %v3402_v7 = vpop.eup %3401  ;;  %v823_v9 = vsel %vm724_vm3, %v3400_v5, 0.0 }
 0x295   : > { %v818_v2 = vadd.f32 %v817_v35, %v816_v59  ;;  %v3404_v10 = vpop.eup %3403  ;;  %v825_v12 = vsel %vm724_vm3, %v3402_v7, 0.0 }
 0x296   : > { %v3406_v13 = vpop.eup %3405  ;;  %v827_v15 = vsel %vm724_vm3, %v3404_v10, 0.0 }
 0x297   : > { %v820_v6 = vadd.f32 %v819_v4, %v818_v2  ;;  %v3408_v16 = vpop.eup %3407  ;;  %v829_v18 = vsel %vm724_vm3, %v3406_v13, 0.0 }
 0x298   : > { %v3410_v19 = vpop.eup %3409  ;;  %v831_v34 = vsel %vm724_vm3, %v3408_v16, 0.0 }
 0x299   : > { %v822_v8 = vadd.f32 %v821_v52, %v820_v6  ;;  %v3412_v36 = vpop.eup %3411  ;;  %v833_v38 = vsel %vm724_vm3, %v3410_v19, 0.0 }
 0x29a   : > { %v3414_v39 = vpop.eup %3413  ;;  %v835_v22 = vsel %vm724_vm3, %v3412_v36, 0.0 }
 0x29b   : > { %v824_v11 = vadd.f32 %v823_v9, %v822_v8  ;;  %v3416_v20 = vpop.eup %3415  ;;  %v837_v24 = vsel %vm724_vm3, %v3414_v39, 0.0 }
 0x29c   : > { %v839_v28 = vsel %vm724_vm3, %v3416_v20, 0.0 }
 0x29d   : > { %v826_v14 = vadd.f32 %v825_v12, %v824_v11 }
 0x29f   : > { %v828_v17 = vadd.f32 %v827_v15, %v826_v14 }
 0x2a1   : > { %v830_v33 = vadd.f32 %v829_v18, %v828_v17 }
 0x2a3   : > { %v832_v37 = vadd.f32 %v831_v34, %v830_v33 }
 0x2a5   : > { %v834_v40 = vadd.f32 %v833_v38, %v832_v37 }
 0x2a7   : > { %v836_v23 = vadd.f32 %v835_v22, %v834_v40 }
 0x2a9   : > { %v838_v26 = vadd.f32 %v837_v24, %v836_v23 }
 0x2ab   : > { %v840_v41 = vadd.f32 %v839_v28, %v838_v26 }
 0x2ad   : > { %v841_v25 = vrot.slane %v840_v41, 4 }
 0x2af   : > { %v842_v42 = vadd.f32 %v841_v25, %v840_v41 }
 0x2b1   : > { %v843_v27 = vrot.slane %v842_v42, 2 }
 0x2b3   : > { %v844_v30 = vadd.f32 %v843_v27, %v842_v42 }
 0x2b5   : > { %v845_v32 = vrot.slane %v844_v30, 1 }
 0x2b7   : > { %v846_v29 = vadd.f32 %v845_v32, %v844_v30 }
 0x2b9   : > { %3417 = vrcp.f32 %v846_v29 }
 0x2c6   : > { %v3418_v47 = vpop.eup %3417 }
 0x2c7   : > { %v848_v49 = vmul.f32 %v3418_v47, %v3775_v44  ;;  %v849_v43 = vmul.f32 %v3418_v47, %v3778_v45  ;;  %v850_v50 = vmul.f32 %v3418_v47, %v3782_v46  ;;  %v851_v51 = vmul.f32 %v3418_v47, %v3787_v48  ;;  %v1026_v44 = vpop.permute.xlu1 %1025 }
 0x2c8   : > { %v852_v54 = vmul.f32 %v3418_v47, %v3394_v53  ;;  %v853_v55 = vmul.f32 %v3418_v47, %v3396_v58  ;;  %v854_v56 = vmul.f32 %v3418_v47, %v3398_v1  ;;  %v855_v57 = vmul.f32 %v3418_v47, %v3400_v5 }
 0x2c9   : > { %v864_v59 = vpack.c.bf16 %v849_v43, %v848_v49  ;;  %v865_v0 = vpack.c.bf16 %v851_v51, %v850_v50  ;;  %v856_v35 = vmul.f32 %v3418_v47, %v3402_v7  ;;  %v857_v2 = vmul.f32 %v3418_v47, %v3404_v10  ;;  %v1024_v7 = vpop.permute.xlu0 %1023 }
 0x2ca   : > { %v866_v3 = vpack.c.bf16 %v853_v55, %v852_v54  ;;  %v867_v4 = vpack.c.bf16 %v855_v57, %v854_v56  ;;  %v858_v6 = vmul.f32 %v3418_v47, %v3406_v13  ;;  %v859_v21 = vmul.f32 %v3418_v47, %v3408_v16 }
 0x2cb   : > { %3128 = vmatprep.mubr.msk.bf16.mxu1 %vm724_vm3, %v864_v59  ;;  %v868_v45 = vpack.c.bf16 %v857_v2, %v856_v35  ;;  %v860_v52 = vmul.f32 %v3418_v47, %v3410_v19  ;;  %v861_v46 = vmul.f32 %v3418_v47, %v3412_v36  ;;  %v862_v8 = vmul.f32 %v3418_v47, %v3414_v39  ;;  %v1022_v10 = vpop.permute.xlu1 %1021 }
 0x2cc   : > { %3129 = vmatmul.mubr.msk.bf16.vlgmr.msra.gmra.mxu1 %vm724_vm3, %v865_v0  ;;  %v869_v48 = vpack.c.bf16 %v859_v21, %v858_v6  ;;  %v863_v53 = vmul.f32 %v3418_v47, %v3416_v20  ;;  %v1060_v5 = vsel %vm590_vm2, %v1026_v44, 0  ;;  %v1057_v9 = vsel %vm590_vm2, %v1024_v7, 0 }
 0x2cd   : > { %3145 = vmatpush3.bf16.xpose.msra.mxu1 %v1063_v31  ;;  %3132 = vmatprep.mubr.msk.bf16.mxu1 %vm724_vm3, %v866_v3  ;;  %v870_v58 = vpack.c.bf16 %v861_v46, %v860_v52  ;;  %v1006_v11 = vpop.permute.xlu0 %1005  ;;  %v1054_v13 = vsel %vm590_vm2, %v1022_v10, 0 }
 0x2ce   : > { %3329 = vmatprep.subr.msk.bf16.mxu1 %vm590_vm2, %v1026_v44  ;;  %v871_v1 = vpack.c.bf16 %v863_v53, %v862_v8 }
 0x2cf   : > { %v1008_v12 = vpop.permute.xlu1 %1007 }
 0x2d1   : > { %v1465_v14 = vpop.permute.xlu0 %1464 }
 0x2d2   : > { %v1500_v17 = vsel %vm590_vm2, %v1465_v14, 0 }
 0x2d3   : > { %v1010_v15 = vpop.permute.xlu1 %1009 }
 0x2d4   : > { %3133 = vmatmul.mubr.msk.bf16.gmra.mxu1 %vm724_vm3, %v867_v4 }
 0x2d5   : > { %3147 = vmatpush3.bf16.xpose.msra.mxu1 %v1060_v5  ;;  %3136 = vmatprep.mubr.msk.bf16.mxu1 %vm724_vm3, %v868_v45  ;;  %v1012_v16 = vpop.permute.xlu0 %1011 }
 0x2d6   : > { %3330 = vmatprep.subr.msk.bf16.mxu1 %vm590_vm2, %v1024_v7 }
 0x2d7   : > { %v1463_v18 = vpop.permute.xlu1 %1462 }
 0x2d8   : > { %v1497_v34 = vsel %vm590_vm2, %v1463_v18, 0 }
 0x2d9   : > { %v1014_v19 = vpop.permute.xlu0 %1013 }
 0x2db   : > { %v1016_v33 = vpop.permute.xlu1 %1015 }
 0x2dc   : > { %3137 = vmatmul.mubr.msk.bf16.gmra.mxu1 %vm724_vm3, %v869_v48 }
 0x2dd   : > { %3149 = vmatpush3.bf16.xpose.msra.mxu1 %v1057_v9  ;;  %3140 = vmatprep.mubr.msk.bf16.mxu1 %vm724_vm3, %v870_v58  ;;  %v1461_v36 = vpop.permute.xlu0 %1460 }
 0x2de   : > { %3331 = vmatprep.subr.msk.bf16.mxu1 %vm590_vm2, %v1022_v10  ;;  %v1494_v39 = vsel %vm590_vm2, %v1461_v36, 0 }
 0x2df   : > { %v1018_v37 = vpop.permute.xlu1 %1017 }
 0x2e1   : > { %v1020_v38 = vpop.permute.xlu0 %1019 }
 0x2e3   : > { %v1459_v40 = vpop.permute.xlu1 %1458 }
 0x2e4   : > { %3141 = vmatmul.mubr.msk.bf16.gmra.mxu1 %vm724_vm3, %v871_v1  ;;  %v1491_v23 = vsel %vm590_vm2, %v1459_v40, 0 }
 0x2e5   : > { %3151 = vmatpush3.bf16.xpose.msra.mxu1 %v1054_v13  ;;  %3152 = vmatprep.mubr.msk.bf16.mxu1 %vm590_vm2, %v1006_v11  ;;  %v1443_v22 = vpop.permute.xlu0 %1442 }
 0x2e6   : > { %3332 = vmatprep.subr.msk.bf16.mxu1 %vm590_vm2, %v1465_v14 }
 0x2e7   : > { %v1445_v20 = vpop.permute.xlu1 %1444 }
 0x2e9   : > { %v1902_v24 = vpop.permute.xlu0 %1901 }
 0x2ea   : > { %v1937_v41 = vsel %vm590_vm2, %v1902_v24, 0 }
 0x2eb   : > { %v1447_v26 = vpop.permute.xlu1 %1446 }
 0x2ec   : > { %3153 = vmatmul.mubr.msk.bf16.vlgmr.msra.gmra.mxu1 %vm590_vm2, %v1008_v12 }
 0x2ed   : > { %3193 = vmatpush3.bf16.xpose.msra.mxu1 %v1500_v17  ;;  %3156 = vmatprep.mubr.msk.bf16.mxu1 %vm590_vm2, %v1010_v15  ;;  %v1449_v28 = vpop.permute.xlu0 %1448 }
 0x2ee   : > { %3333 = vmatprep.subr.msk.bf16.mxu1 %vm590_vm2, %v1463_v18 }
 0x2ef   : > { %v1900_v25 = vpop.permute.xlu1 %1899 }
 0x2f0   : > { %v1934_v30 = vsel %vm590_vm2, %v1900_v25, 0 }
 0x2f1   : > { %v1451_v42 = vpop.permute.xlu0 %1450 }
 0x2f3   : > { %v1453_v27 = vpop.permute.xlu1 %1452 }
 0x2f4   : > { %3157 = vmatmul.mubr.msk.bf16.gmra.mxu1 %vm590_vm2, %v1012_v16 }
 0x2f5   : > { %3195 = vmatpush3.bf16.xpose.msra.mxu1 %v1497_v34  ;;  %3160 = vmatprep.mubr.msk.bf16.mxu1 %vm590_vm2, %v1014_v19  ;;  %v1898_v32 = vpop.permute.xlu0 %1897 }
 0x2f6   : > { %3334 = vmatprep.subr.msk.bf16.mxu1 %vm590_vm2, %v1461_v36  ;;  %v1931_v47 = vsel %vm590_vm2, %v1898_v32, 0 }
 0x2f7   : > { %v1455_v29 = vpop.permute.xlu1 %1454 }
 0x2f9   : > { %v1457_v49 = vpop.permute.xlu0 %1456 }
 0x2fb   : > { %v1896_v31 = vpop.permute.xlu1 %1895 }
 0x2fc   : > { %3161 = vmatmul.mubr.msk.bf16.gmra.mxu1 %vm590_vm2, %v1016_v33  ;;  %v1928_v43 = vsel %vm590_vm2, %v1896_v31, 0 }
 0x2fd   : > { %3197 = vmatpush3.bf16.xpose.msra.mxu1 %v1494_v39  ;;  %3164 = vmatprep.mubr.msk.bf16.mxu1 %vm590_vm2, %v1018_v37  ;;  %v1880_v50 = vpop.permute.xlu0 %1879 }
 0x2fe   : > { %3335 = vmatprep.subr.msk.bf16.mxu1 %vm590_vm2, %v1459_v40 }
 0x2ff   : > { %v1882_v51 = vpop.permute.xlu1 %1881 }
 0x301   : > { %v1884_v54 = vpop.permute.xlu0 %1883 }
 0x303   : > { %v1886_v55 = vpop.permute.xlu1 %1885 }
 0x304   : > { %3165 = vmatmul.mubr.msk.bf16.gmra.mxu1 %vm590_vm2, %v1020_v38 }
 0x305   : > { %3199 = vmatpush3.bf16.xpose.msra.mxu1 %v1491_v23  ;;  %3200 = vmatprep.mubr.msk.bf16.mxu1 %vm590_vm2, %v1443_v22  ;;  %v1888_v56 = vpop.permute.xlu0 %1887 }
 0x306   : > { %3336 = vmatprep.subr.msk.bf16.mxu1 %vm590_vm2, %v1902_v24 }
 0x307   : > { %v1890_v57 = vpop.permute.xlu1 %1889 }
 0x309   : > { %v1892_v59 = vpop.permute.xlu0 %1891 }
 0x30b   : > { %v1894_v0 = vpop.permute.xlu1 %1893 }
 0x30c   : > { %3201 = vmatmul.mubr.msk.bf16.vlgmr.msra.gmra.mxu1 %vm590_vm2, %v1445_v20 }
 0x30d   : > { %3241 = vmatpush3.bf16.xpose.msra.mxu1 %v1937_v41  ;;  %3204 = vmatprep.mubr.msk.bf16.mxu1 %vm590_vm2, %v1447_v26  ;;  %v1316_v5 = vpop.permute.xlu0 %1315 }
 0x30e   : > { %3337 = vmatprep.subr.msk.bf16.mxu1 %vm590_vm2, %v1900_v25  ;;  %3168 = vmatprep.subr.bf16.mxu0 %v1316_v5 }
 0x30f   : > { %3169 = vmatpush3.bf16.msra.mxu0 %v1316_v5  ;;  %v1314_v10 = vpop.permute.xlu1 %1313 }
 0x310   : > { %3170 = vmatprep.subr.bf16.mxu0 %v1314_v10 }
 0x311   : > { %v1312_v13 = vpop.permute.xlu0 %1311 }
 0x313   : > { %3171 = vmatpush3.bf16.msra.mxu0 %v1314_v10  ;;  %v1310_v16 = vpop.permute.xlu1 %1309 }
 0x314   : > { %3205 = vmatmul.mubr.msk.bf16.gmra.mxu1 %vm590_vm2, %v1449_v28  ;;  %3172 = vmatprep.subr.bf16.mxu0 %v1312_v13 }
 0x315   : > { %3243 = vmatpush3.bf16.xpose.msra.mxu1 %v1934_v30  ;;  %3208 = vmatprep.mubr.msk.bf16.mxu1 %vm590_vm2, %v1451_v42 }
 0x316   : > { %3338 = vmatprep.subr.msk.bf16.mxu1 %vm590_vm2, %v1898_v32 }
 0x317   : > { %3173 = vmatpush3.bf16.msra.mxu0 %v1312_v13 }
 0x318   : > { %3174 = vmatprep.subr.bf16.mxu0 %v1310_v16 }
 0x31b   : > { %3175 = vmatpush3.bf16.msra.mxu0 %v1310_v16 }
 0x31c   : > { %3209 = vmatmul.mubr.msk.bf16.gmra.mxu1 %vm590_vm2, %v1453_v27 }
 0x31d   : > { %3245 = vmatpush3.bf16.xpose.msra.mxu1 %v1931_v47  ;;  %3212 = vmatprep.mubr.msk.bf16.mxu1 %vm590_vm2, %v1455_v29 }
 0x31e   : > { %3339 = vmatprep.subr.msk.bf16.mxu1 %vm590_vm2, %v1896_v31 }
 0x324   : > { %3213 = vmatmul.mubr.msk.bf16.gmra.mxu1 %vm590_vm2, %v1457_v49 }
 0x325   : > { %3247 = vmatpush3.bf16.xpose.msra.mxu1 %v1928_v43  ;;  %3248 = vmatprep.mubr.msk.bf16.mxu1 %vm590_vm2, %v1880_v50 }
 0x32c   : > { %3249 = vmatmul.mubr.msk.bf16.vlgmr.msra.gmra.mxu1 %vm590_vm2, %v1882_v51 }
 0x32d   : > { %3252 = vmatprep.mubr.msk.bf16.mxu1 %vm590_vm2, %v1884_v54 }
 0x334   : > { %3253 = vmatmul.mubr.msk.bf16.gmra.mxu1 %vm590_vm2, %v1886_v55 }
 0x335   : > { %3256 = vmatprep.mubr.msk.bf16.mxu1 %vm590_vm2, %v1888_v56 }
 0x33c   : > { %3257 = vmatmul.mubr.msk.bf16.gmra.mxu1 %vm590_vm2, %v1890_v57 }
 0x33d   : > { %3260 = vmatprep.mubr.msk.bf16.mxu1 %vm590_vm2, %v1892_v59 }
 0x344   : > { %3261 = vmatmul.mubr.msk.bf16.gmra.mxu1 %vm590_vm2, %v1894_v0 }
 0x38c   : > { %v3879_v35 = vpop.f32.mrf.mxu1 }
 0x38d   : > { %4829 = vst [vmem:[#allocation4_spill] sm:$0xff] %v3879_v35 }
 0x38e   : > { %v3881_v2 = vpop.f32.mrf.mxu1 }
 0x38f   : > { %4830 = vst [vmem:[#allocation5_spill] sm:$0xff] %v3881_v2 }
 0x390   : > { %v3883_v3 = vpop.f32.mrf.mxu1 }
 0x391   : > { %4831 = vst [vmem:[#allocation6_spill] sm:$0xff] %v3883_v3 }
 0x392   : > { %v3885_v4 = vpop.f32.mrf.mxu1 }
 0x393   : > { %4832 = vst [vmem:[#allocation7_spill] sm:$0xff] %v3885_v4 }
 0x394   : > { %v3887_v6 = vpop.f32.mrf.mxu1 }
 0x395   : > { %4833 = vst [vmem:[#allocation8_spill] sm:$0xff] %v3887_v6 }
 0x396   : > { %v3889_v21 = vpop.f32.mrf.mxu1 }
 0x397   : > { %4834 = vst [vmem:[#allocation9_spill] sm:$0xff] %v3889_v21 }
 0x398   : > { %v3891_v44 = vpop.f32.mrf.mxu1 }
 0x399   : > { %4835 = vst [vmem:[#allocation10_spill] sm:$0xff] %v3891_v44 }
 0x39a   : > { %v3893_v60 = vpop.f32.mrf.mxu1 }
 0x39b   : > { %4836 = vst [vmem:[#allocation11_spill] sm:$0xff] %v3893_v60 }
 0x39c   : > { %v3895_v61 = vpop.f32.mrf.mxu1 }
 0x39d   : > { %4837 = vst [vmem:[#allocation12_spill] sm:$0xff] %v3895_v61 }
 0x39e   : > { %v3897_v62 = vpop.f32.mrf.mxu1 }
 0x39f   : > { %4838 = vst [vmem:[#allocation13_spill] sm:$0xff] %v3897_v62 }
 0x3a0   : > { %v3899_v63 = vpop.f32.mrf.mxu1 }
 0x3a1   : > { %4839 = vst [vmem:[#allocation14_spill] sm:$0xff] %v3899_v63 }
 0x3a2   : > { %v3901_v45 = vpop.f32.mrf.mxu1 }
 0x3a3   : > { %4840 = vst [vmem:[#allocation15_spill] sm:$0xff] %v3901_v45 }
 0x3a4   : > { %v3903_v52 = vpop.f32.mrf.mxu1 }
 0x3a5   : > { %4841 = vst [vmem:[#allocation16_spill] sm:$0xff] %v3903_v52 }
 0x3a6   : > { %v3905_v46 = vpop.f32.mrf.mxu1 }
 0x3a7   : > { %4842 = vst [vmem:[#allocation17_spill] sm:$0xff] %v3905_v46 }
 0x3a8   : > { %v3907_v8 = vpop.f32.mrf.mxu1 }
 0x3a9   : > { %4843 = vst [vmem:[#allocation18_spill] sm:$0xff] %v3907_v8 }
 0x3aa   : > { %v3909_v48 = vpop.f32.mrf.mxu1 }
 0x3ab   : > { %4844 = vst [vmem:[#allocation19_spill] sm:$0xff] %v3909_v48 }
 0x3ac   : > { %v3911_v53 = vpop.f32.mrf.mxu1 }
 0x3ad   : > { %v1164_v22 = vsel %vm724_vm3, %v3911_v53, -inf }
 0x3ae   : > { %v3913_v58 = vpop.f32.mrf.mxu1 }
 0x3af   : > { %v1162_v20 = vsel %vm724_vm3, %v3913_v58, -inf }
 0x3b0   : > { %v3915_v1 = vpop.f32.mrf.mxu1 }
 0x3b1   : > { %v1165_v34 = vsel %vm724_vm3, %v3915_v1, -inf }
 0x3b2   : > { %v3917_v7 = vpop.f32.mrf.mxu1 }
 0x3b3   : > { %v1163_v26 = vsel %vm724_vm3, %v3917_v7, -inf }
 0x3b4   : > { %v3919_v9 = vpop.f32.mrf.mxu1 }
 0x3b5   : > { %v1170_v37 = vsel %vm724_vm3, %v3919_v9, -inf }
 0x3b6   : > { %v3921_v11 = vpop.f32.mrf.mxu1  ;;  %v1171_v42 = vmax.f32 %v1164_v22, %v1170_v37  ;;  %v3981_v37 = vpop.permute.xlu0 %1752 }
 0x3b7   : > { %v1166_v38 = vsel %vm724_vm3, %v3921_v11, -inf  ;;  %4845 = vst [vmem:[#allocation20_spill] sm:$0xff] %v3981_v37  ;;  %3216 = vmatprep.subr.bf16.mxu0 %v3981_v37 }
 0x3b8   : > { %v3923_v12 = vpop.f32.mrf.mxu1  ;;  %v1167_v27 = vmax.f32 %v1162_v20, %v1166_v38 }
 0x3b9   : > { %v1172_v33 = vsel %vm724_vm3, %v3923_v12, -inf }
 0x3ba   : > { %v3925_v14 = vpop.f32.mrf.mxu1  ;;  %v1173_v23 = vmax.f32 %v1165_v34, %v1172_v33 }
 0x3bb   : > { %v1168_v39 = vsel %vm724_vm3, %v3925_v14, -inf }
 0x3bc   : > { %v3927_v15 = vpop.f32.mrf.mxu1  ;;  %v1169_v30 = vmax.f32 %v1163_v26, %v1168_v39 }
 0x3bd   : > { %v1178_v28 = vsel %vm724_vm3, %v3927_v15, -inf }
 0x3be   : > { %v3929_v17 = vpop.f32.mrf.mxu1  ;;  %v1179_v43 = vmax.f32 %v1171_v42, %v1178_v28 }
 0x3bf   : > { %v1174_v41 = vsel %vm724_vm3, %v3929_v17, -inf }
 0x3c0   : > { %v3931_v18 = vpop.f32.mrf.mxu1  ;;  %v1175_v50 = vmax.f32 %v1167_v27, %v1174_v41 }
 0x3c1   : > { %v1180_v40 = vsel %vm724_vm3, %v3931_v18, -inf }
 0x3c2   : > { %v3933_v19 = vpop.f32.mrf.mxu1  ;;  %v1181_v32 = vmax.f32 %v1173_v23, %v1180_v40 }
 0x3c3   : > { %v1176_v25 = vsel %vm724_vm3, %v3933_v19, -inf }
 0x3c4   : > { %v3939_v36 = vpop.f32.mrf.mxu1  ;;  %v1177_v51 = vmax.f32 %v1169_v30, %v1176_v25 }
 0x3c5   : > { %v1186_v47 = vsel %vm724_vm3, %v3939_v36, -inf }
 0x3c6   : > { %v3953_v24 = vpop.f32.mrf.mxu1  ;;  %v1187_v57 = vmax.f32 %v1179_v43, %v1186_v47 }
 0x3c7   : > { %v1182_v31 = vsel %vm724_vm3, %v3953_v24, -inf }
 0x3c8   : > { %v3963_v29 = vpop.f32.mrf.mxu1  ;;  %v1183_v59 = vmax.f32 %v1175_v50, %v1182_v31 }
 0x3c9   : > { %v1188_v49 = vsel %vm724_vm3, %v3963_v29, -inf }
 0x3ca   : > { %v1189_v54 = vmax.f32 %v1181_v32, %v1188_v49  ;;  %v3971_v55 = vpop.f32.mrf.mxu1 }
 0x3cb   : > { %v1184_v56 = vsel %vm724_vm3, %v3971_v55, -inf }
 0x3cc   : > { %v1185_v0 = vmax.f32 %v1177_v51, %v1184_v56  ;;  %v3975_v5 = vpop.f32.mrf.mxu1  ;;  %v1191_v10 = vmax.f32 %v1187_v57, %v1189_v54 }
 0x3cd   : > { %v1601_v47 = vsel %vm724_vm3, %v3975_v5, -inf }
 0x3ce   : > { %v1190_v13 = vmax.f32 %v1183_v59, %v1185_v0  ;;  %v3977_v16 = vpop.f32.mrf.mxu1 }
 0x3cf   : > { %v1599_v31 = vsel %vm724_vm3, %v3977_v16, -inf }
 0x3d0   : > { %v1192_v33 = vmax.f32 %v1190_v13, %v1191_v10  ;;  %v3979_v34 = vpop.f32.mrf.mxu1 }
 0x3d1   : > { %v1602_v56 = vsel %vm724_vm3, %v3979_v34, -inf }
 0x3d2   : > { %v1193_v38 = vrot.slane %v1192_v33, 4  ;;  %v3983_v39 = vpop.f32.mrf.mxu1 }
 0x3d3   : > { %v1600_v0 = vsel %vm724_vm3, %v3983_v39, -inf }
 0x3d4   : > { %v1194_v40 = vmax.f32 %v1192_v33, %v1193_v38  ;;  %v3986_v22 = vpop.f32.mrf.mxu1 }
 0x3d5   : > { %v1607_v27 = vsel %vm724_vm3, %v3986_v22, -inf }
 0x3d6   : > { %v1195_v20 = vrot.slane %v1194_v40, 2  ;;  %v3988_v23 = vpop.f32.mrf.mxu1  ;;  %v1608_v10 = vmax.f32 %v1601_v47, %v1607_v27 }
 0x3d7   : > { %v4000_v30 = vsel %vm724_vm3, %v3988_v23, -inf }
 0x3d8   : > { %v1196_v26 = vmax.f32 %v1194_v40, %v1195_v20  ;;  %v3990_v28 = vpop.f32.mrf.mxu1 }
 0x3d9   : > { %v1609_v49 = vsel %vm724_vm3, %v3990_v28, -inf }
 0x3da   : > { %v1197_v41 = vrot.slane %v1196_v26, 1  ;;  %v3992_v25 = vpop.f32.mrf.mxu1  ;;  %v1610_v13 = vmax.f32 %v1602_v56, %v1609_v49 }
 0x3db   : > { %v1605_v43 = vsel %vm724_vm3, %v3992_v25, -inf }
 0x3dc   : > { %v3994_v42 = vmax.f32 %v1196_v26, %v1197_v41  ;;  %v4002_v32 = vpop.f32.mrf.mxu1  ;;  %v1606_v33 = vmax.f32 %v1600_v0, %v1605_v43 }
 0x3de   : > { %v1199_v50 = vsub.f32 %v3913_v58, %v3994_v42  ;;  %v1200_v51 = vsub.f32 %v3917_v7, %v3994_v42  ;;  %v1201_v54 = vsub.f32 %v3911_v53, %v3994_v42  ;;  %v4020_v57 = vpop.f32.mrf.mxu1  ;;  %v1202_v59 = vsub.f32 %v3915_v1, %v3994_v42 }
 0x3df   : > { %v1604_v58 = vmax.f32 %v1599_v31, %v4000_v30  ;;  %v1203_v7 = vsub.f32 %v3921_v11, %v3994_v42  ;;  %v1615_v53 = vsel %vm724_vm3, %v4002_v32, -inf  ;;  %v1204_v40 = vsub.f32 %v3925_v14, %v3994_v42 }
 0x3e0   : > { %v4031_v38 = vpop.f32.mrf.mxu1  ;;  %v1205_v1 = vsub.f32 %v3919_v9, %v3994_v42  ;;  %v1206_v20 = vsub.f32 %v3923_v12, %v3994_v42  ;;  %v1207_v26 = vsub.f32 %v3929_v17, %v3994_v42  ;;  %v1208_v11 = vsub.f32 %v3933_v19, %v3994_v42 }
 0x3e1   : > { %v1215_v41 = vmul.f32 1.442695, %v1199_v50  ;;  %v1217_v27 = vmul.f32 1.442695, %v1200_v51  ;;  %v1219_v30 = vmul.f32 1.442695, %v1201_v54  ;;  %v1209_v14 = vsub.f32 %v3927_v15, %v3994_v42  ;;  %v4059_v51 = vpop.permute.xlu1 %1750 }
 0x3e2   : > { %v4043_v47 = vpop.f32.mrf.mxu1  ;;  %v1210_v9 = vsub.f32 %v3931_v18, %v3994_v42  ;;  %v1211_v12 = vsub.f32 %v3953_v24, %v3994_v42  ;;  %v1221_v31 = vmul.f32 1.442695, %v1202_v59  ;;  %v1212_v17 = vsub.f32 %v3971_v55, %v3994_v42  ;;  %4846 = vst [vmem:[#allocation21_spill] sm:$0xff] %v4059_v51 }
 0x3e3   : > { %v1213_v19 = vsub.f32 %v3939_v36, %v3994_v42  ;;  %3419 = vpow2.f32 %v1215_v41  ;;  %v1223_v49 = vmul.f32 1.442695, %v1203_v7  ;;  %v1214_v15 = vsub.f32 %v3963_v29, %v3994_v42 }
 0x3e4   : > { %v4055_v43 = vpop.f32.mrf.mxu1  ;;  %3421 = vpow2.f32 %v1217_v27  ;;  %v1225_v50 = vmul.f32 1.442695, %v1204_v40  ;;  %v1616_v18 = vmax.f32 %v1608_v10, %v1615_v53  ;;  %v1227_v24 = vmul.f32 1.442695, %v1205_v1 }
 0x3e5   : > { %3423 = vpow2.f32 %v1219_v30  ;;  %v1229_v54 = vmul.f32 1.442695, %v1206_v20  ;;  %v1231_v56 = vmul.f32 1.442695, %v1207_v26  ;;  %v1233_v36 = vmul.f32 1.442695, %v1208_v11  ;;  %v4075_v20 = vpop.permute.xlu0 %1748  ;;  %v4077_v26 = vpop.permute.xlu1 %1746 }
 0x3e6   : > { %v4061_v55 = vpop.f32.mrf.mxu1  ;;  %3425 = vpow2.f32 %v1221_v31  ;;  %v1611_v59 = vsel %vm724_vm3, %v4020_v57, -inf  ;;  %v1617_v0 = vsel %vm724_vm3, %v4031_v38, -inf  ;;  %v1235_v29 = vmul.f32 1.442695, %v1209_v14  ;;  %4847 = vst [vmem:[#allocation22_spill] sm:$0xff] %v4075_v20  ;;  %4848 = vst [vmem:[#allocation23_spill] sm:$0xff] %v4077_v26 }
 0x3e7   : > { %3427 = vpow2.f32 %v1223_v49  ;;  %v1237_v42 = vmul.f32 1.442695, %v1210_v9  ;;  %v1613_v10 = vsel %vm724_vm3, %v4043_v47, -inf  ;;  %v1618_v53 = vmax.f32 %v1610_v13, %v1617_v0 }
 0x3e8   : > { %v4069_v7 = vpop.f32.mrf.mxu1  ;;  %3429 = vpow2.f32 %v1225_v50  ;;  %v1623_v40 = vsel %vm724_vm3, %v4055_v43, -inf  ;;  %v1619_v1 = vsel %vm724_vm3, %v4061_v55, -inf  ;;  %v1612_v11 = vmax.f32 %v1604_v58, %v1611_v59 }
 0x3e9   : > { %3431 = vpow2.f32 %v1227_v24  ;;  %v1614_v41 = vmax.f32 %v1606_v33, %v1613_v10  ;;  %v1625_v27 = vsel %vm724_vm3, %v4069_v7, -inf  ;;  %v1239_v13 = vmul.f32 1.442695, %v1211_v12  ;;  %v4087_v33 = vpop.permute.xlu0 %2189  ;;  %v4089_v24 = vpop.permute.xlu1 %2187 }
 0x3ea   : > { %v4081_v30 = vpop.f32.mrf.mxu1  ;;  %3433 = vpow2.f32 %v1229_v54  ;;  %v1626_v14 = vmax.f32 %v1618_v53, %v1625_v27  ;;  %v1624_v31 = vmax.f32 %v1616_v18, %v1623_v40  ;;  %v1620_v49 = vmax.f32 %v1612_v11, %v1619_v1  ;;  %4849 = vst [vmem:[#allocation24_spill] sm:$0xff] %v4087_v33  ;;  %4850 = vst [vmem:[#allocation25_spill] sm:$0xff] %v4089_v24 }
 0x3eb   : > { %v1621_v9 = vsel %vm724_vm3, %v4081_v30, -inf  ;;  %3435 = vpow2.f32 %v1231_v56  ;;  %v1241_v58 = vmul.f32 1.442695, %v1212_v17  ;;  %v1243_v59 = vmul.f32 1.442695, %v1213_v19  ;;  %3312 = vmatprep.subr.bf16.mxu1 %v4087_v33 }
 0x3ec   : > { %v1622_v50 = vmax.f32 %v1614_v41, %v1621_v9  ;;  %v4085_v0 = vpop.f32.mrf.mxu1  ;;  %3437 = vpow2.f32 %v1233_v36  ;;  %v1628_v54 = vmax.f32 %v1624_v31, %v1626_v14  ;;  %v1245_v18 = vmul.f32 1.442695, %v1214_v15  ;;  %3316 = vmatpush3.bf16.msra.mxu1 %v4087_v33 }
 0x3ed   : > { %3439 = vpow2.f32 %v1235_v29  ;;  %3313 = vmatprep.subr.bf16.mxu1 %v4089_v24  ;;  %v4100_v19 = vpop.permute.xlu0 %2185  ;;  %v4122_v31 = vpop.permute.xlu1 %2183  ;;  %v4160_v63 = vsel %vm724_vm3, %v4085_v0, -inf }
 0x3ee   : > { %v1627_v12 = vmax.f32 %v1620_v49, %v1622_v50  ;;  %v4091_v10 = vpop.f32.mrf.mxu1  ;;  %3441 = vpow2.f32 %v1237_v42  ;;  %4851 = vst [vmem:[#allocation26_spill] sm:$0xff] %v4100_v19  ;;  %4852 = vst [vmem:[#allocation27_spill] sm:$0xff] %v4122_v31 }
 0x3ef   : > { %3443 = vpow2.f32 %v1239_v13 }
 0x3f0   : > { %v1629_v56 = vmax.f32 %v1627_v12, %v1628_v54  ;;  %v4095_v36 = vpop.f32.mrf.mxu1  ;;  %v4098_v17 = vpop.eup %3419  ;;  %3445 = vpow2.f32 %v1241_v58  ;;  %3317 = vmatpush3.bf16.msra.mxu1 %v4089_v24 }
 0x3f1   : > { %v4102_v29 = vpop.eup %3421  ;;  %3447 = vpow2.f32 %v1243_v59  ;;  %v1247_v42 = vsel %vm724_vm3, %v4098_v17, 0.0  ;;  %3314 = vmatprep.subr.bf16.mxu1 %v4100_v19  ;;  %v4173_v61 = vsel %vm724_vm3, %v4095_v36, -inf }
 0x3f2   : > { %v1630_v15 = vrot.slane %v1629_v56, 4  ;;  %v4106_v53 = vpop.f32.mrf.mxu1  ;;  %v4108_v40 = vpop.eup %3423  ;;  %3449 = vpow2.f32 %v1245_v18  ;;  %v1248_v1 = vsel %vm724_vm3, %v4102_v29, 0.0 }
 0x3f3   : > { %v4113_v11 = vpop.eup %3425  ;;  %v1249_v41 = vadd.f32 %v1248_v1, %v1247_v42  ;;  %v1250_v9 = vsel %vm724_vm3, %v4108_v40, 0.0 }
 0x3f4   : > { %v1631_v27 = vmax.f32 %v1629_v56, %v1630_v15  ;;  %v4115_v13 = vpop.f32.mrf.mxu1  ;;  %v4118_v14 = vpop.eup %3427  ;;  %v1252_v12 = vsel %vm724_vm3, %v4113_v11, 0.0  ;;  %3318 = vmatpush3.bf16.msra.mxu1 %v4100_v19 }
 0x3f5   : > { %v4124_v49 = vpop.eup %3429  ;;  %v1251_v50 = vadd.f32 %v1250_v9, %v1249_v41  ;;  %3315 = vmatprep.subr.bf16.mxu1 %v4122_v31  ;;  %v1254_v41 = vsel %vm724_vm3, %v4118_v14, 0.0  ;;  %v4146_v52 = vsel %vm724_vm3, %v4115_v13, -inf }
 0x3f6   : > { %v1632_v58 = vrot.slane %v1631_v27, 2  ;;  %v4126_v59 = vpop.f32.mrf.mxu1  ;;  %v4128_v54 = vpop.eup %3431 }
 0x3f7   : > { %v4133_v18 = vpop.eup %3433  ;;  %v1253_v56 = vadd.f32 %v1252_v12, %v1251_v50  ;;  %v1256_v12 = vsel %vm724_vm3, %v4124_v49, 0.0  ;;  %v1258_v6 = vsel %vm724_vm3, %v4128_v54, 0.0 }
 0x3f8   : > { %v1633_v42 = vmax.f32 %v1631_v27, %v1632_v58  ;;  %v4135_v15 = vpop.f32.mrf.mxu1  ;;  %v4138_v1 = vpop.eup %3435  ;;  %v4150_v27 = vsel %vm724_vm3, %v4126_v59, -inf  ;;  %3319 = vmatpush3.bf16.msra.mxu1 %v4122_v31  ;;  %v1260_v4 = vsel %vm724_vm3, %v4133_v18, 0.0 }
 0x3f9   : > { %v4142_v9 = vpop.eup %3437  ;;  %v1255_v8 = vadd.f32 %v1254_v41, %v1253_v56  ;;  %v4164_v56 = vsel %vm724_vm3, %v4091_v10, -inf  ;;  %v4177_v44 = vsel %vm724_vm3, %v4135_v15, -inf  ;;  %v1262_v3 = vsel %vm724_vm3, %v4138_v1, 0.0 }
 0x3fa   : > { %4853 = vst [vmem:[#allocation28_spill] sm:$0xff] %v4142_v9  ;;  %v1634_v45 = vrot.slane %v1633_v42, 1  ;;  %v4152_v50 = vpop.f32.mrf.mxu1  ;;  %v4154_v58 = vpop.eup %3439 }
 0x3fb   : > { %4854 = vst [vmem:[#allocation29_spill] sm:$0xff] %v4154_v58  ;;  %v4167_v41 = vpop.eup %3441  ;;  %v1257_v62 = vadd.f32 %v1256_v12, %v1255_v8  ;;  %v4187_v8 = vsel %vm724_vm3, %v4106_v53, -inf  ;;  %v4201_v2 = vsel %vm724_vm3, %v4152_v50, -inf }
 0x3fc   : > { %4855 = vst [vmem:[#allocation30_spill] sm:$0xff] %v4167_v41  ;;  %v4169_v60 = vmax.f32 %v1633_v42, %v1634_v45  ;;  %v4179_v21 = vpop.f32.mrf.mxu1  ;;  %v4181_v48 = vpop.eup %3443  ;;  %v1264_v42 = vsel %vm724_vm3, %v4142_v9, 0.0  ;;  %v2047_v45 = vmax.f32 %v4173_v61, %v4177_v44 }
 0x3fd   : > { %4856 = vst [vmem:[#allocation31_spill] sm:$0xff] %v4181_v48  ;;  %v4193_v12 = vpop.eup %3445  ;;  %v1259_v46 = vadd.f32 %v1258_v6, %v1257_v62  ;;  %v1266_v6 = vsel %vm724_vm3, %v4154_v58, 0.0  ;;  %v1270_v44 = vsel %vm724_vm3, %v4181_v48, 0.0  ;;  %v2052_v61 = vsel %vm724_vm3, %v4179_v21, -inf }
 0x3fe   : > { %4857 = vst [vmem:[#allocation32_spill] sm:$0xff] %v4193_v12  ;;  %v4203_v35 = vpop.f32.mrf.mxu1  ;;  %v4205_v31 = vpop.eup %3447  ;;  %v1636_v62 = vsub.f32 %v3977_v16, %v4169_v60  ;;  %v1637_v33 = vsub.f32 %v3983_v39, %v4169_v60  ;;  %v1638_v26 = vsub.f32 %v3975_v5, %v4169_v60  ;;  %v1639_v20 = vsub.f32 %v3979_v34, %v4169_v60 }
 0x3ff   : > { %4858 = vst [vmem:[#allocation33_spill] sm:$0xff] %v4205_v31  ;;  %v4215_v19 = vpop.eup %3449  ;;  %v1261_v24 = vadd.f32 %v1260_v4, %v1259_v46  ;;  %v1268_v16 = vsel %vm724_vm3, %v4167_v41, 0.0  ;;  %v2043_v4 = vmax.f32 %v4187_v8, %v4201_v2  ;;  %v1272_v5 = vsel %vm724_vm3, %v4193_v12, 0.0 }
 0x400   : > { %4859 = vst [vmem:[#allocation34_spill] sm:$0xff] %v4215_v19  ;;  %v4223_v51 = vpop.f32.mrf.mxu1  ;;  %v1274_v34 = vsel %vm724_vm3, %v4205_v31, 0.0  ;;  %v1640_v39 = vsub.f32 %v3988_v23, %v4169_v60  ;;  %v1276_v48 = vsel %vm724_vm3, %v4215_v19, 0.0  ;;  %v1641_v2 = vsub.f32 %v3992_v25, %v4169_v60 }
 0x401   : > { %v1263_v46 = vadd.f32 %v1262_v3, %v1261_v24  ;;  %v1642_v3 = vsub.f32 %v3986_v22, %v4169_v60  ;;  %v1652_v24 = vmul.f32 1.442695, %v1636_v62  ;;  %v1654_v12 = vmul.f32 1.442695, %v1637_v33 }
 0x402   : > { %v4239_v37 = vpop.f32.mrf.mxu1  ;;  %v1656_v41 = vmul.f32 1.442695, %v1638_v26  ;;  %v1658_v58 = vmul.f32 1.442695, %v1639_v20  ;;  %v1643_v23 = vsub.f32 %v3990_v28, %v4169_v60  ;;  %v1644_v9 = vsub.f32 %v4020_v57, %v4169_v60 }
 0x403   : > { %v1265_v8 = vadd.f32 %v1264_v42, %v1263_v46  ;;  %v1645_v19 = vsub.f32 %v4043_v47, %v4169_v60  ;;  %3451 = vpow2.f32 %v1652_v24  ;;  %v1646_v22 = vsub.f32 %v4002_v32, %v4169_v60 }
 0x404   : > { %v4247_v31 = vpop.f32.mrf.mxu1  ;;  %3453 = vpow2.f32 %v1654_v12  ;;  %v1660_v33 = vmul.f32 1.442695, %v1640_v39  ;;  %v1647_v20 = vsub.f32 %v4031_v38, %v4169_v60  ;;  %v1648_v28 = vsub.f32 %v4061_v55, %v4169_v60 }
 0x405   : > { %v1267_v25 = vadd.f32 %v1266_v6, %v1265_v8  ;;  %3455 = vpow2.f32 %v1656_v41  ;;  %v1662_v57 = vmul.f32 1.442695, %v1641_v2  ;;  %v1649_v47 = vsub.f32 %v4081_v30, %v4169_v60 }
 0x406   : > { %v4257_v26 = vpop.f32.mrf.mxu1  ;;  %3457 = vpow2.f32 %v1658_v58  ;;  %v1664_v6 = vmul.f32 1.442695, %v1642_v3  ;;  %v1650_v32 = vsub.f32 %v4055_v43, %v4169_v60  ;;  %v1651_v12 = vsub.f32 %v4069_v7, %v4169_v60 }
 0x407   : > { %v1269_v42 = vadd.f32 %v1268_v16, %v1267_v25  ;;  %v1666_v38 = vmul.f32 1.442695, %v1643_v23  ;;  %v1668_v46 = vmul.f32 1.442695, %v1644_v9  ;;  %3459 = vpow2.f32 %v1660_v33 }
 0x408   : > { %v4265_v62 = vpop.f32.mrf.mxu1  ;;  %v2048_v55 = vsel %vm724_vm3, %v4203_v35, -inf  ;;  %v2054_v30 = vsel %vm724_vm3, %v4223_v51, -inf  ;;  %3461 = vpow2.f32 %v1662_v57  ;;  %v1670_v58 = vmul.f32 1.442695, %v1645_v19 }
 0x409   : > { %v1271_v39 = vadd.f32 %v1270_v44, %v1269_v42  ;;  %v1672_v41 = vmul.f32 1.442695, %v1646_v22  ;;  %v2050_v16 = vsel %vm724_vm3, %v4239_v37, -inf  ;;  %3463 = vpow2.f32 %v1664_v6 }
 0x40a   : > { %v4860_v60 = vmax.f32 %v4160_v63, %v4146_v52  ;;  %v2055_v9 = vmax.f32 %v2047_v45, %v2054_v30  ;;  %v4280_v44 = vpop.f32.mrf.mxu1  ;;  %v4861_v2 = vmax.f32 %v4164_v56, %v4150_v27  ;;  %v2060_v19 = vsel %vm724_vm3, %v4247_v31, -inf }
 0x40b   : > { %v1273_v43 = vadd.f32 %v1272_v5, %v1271_v39  ;;  %v2056_v24 = vsel %vm724_vm3, %v4257_v26, -inf  ;;  %v2062_v5 = vsel %vm724_vm3, %v4265_v62, -inf  ;;  %3465 = vpow2.f32 %v1666_v38 }
 0x40c   : > { %v2053_v7 = vmax.f32 %v4860_v60, %v2052_v61  ;;  %v2049_v3 = vmax.f32 %v4861_v2, %v2048_v55  ;;  %v2051_v63 = vmax.f32 %v2043_v4, %v2050_v16  ;;  %v2063_v52 = vmax.f32 %v2055_v9, %v2062_v5 }
 0x40d   : > { %v1275_v8 = vadd.f32 %v1274_v34, %v1273_v43  ;;  %3467 = vpow2.f32 %v1668_v46  ;;  %v1674_v45 = vmul.f32 1.442695, %v1647_v20  ;;  %v1676_v61 = vmul.f32 1.442695, %v1648_v28 }
 0x40e   : > { %v2058_v27 = vsel %vm724_vm3, %v4280_v44, -inf  ;;  %v2061_v23 = vmax.f32 %v2053_v7, %v2060_v19  ;;  %v2057_v25 = vmax.f32 %v2049_v3, %v2056_v24  ;;  %3469 = vpow2.f32 %v1670_v58 }
 0x40f   : > { %v1277_v56 = vadd.f32 %v1276_v48, %v1275_v8  ;;  %v2059_v22 = vmax.f32 %v2051_v63, %v2058_v27  ;;  %v1678_v33 = vmul.f32 1.442695, %v1649_v47  ;;  %v1680_v57 = vmul.f32 1.442695, %v1650_v32 }
 0x410   : > { %v4293_v42 = vpop.eup %3451  ;;  %3471 = vpow2.f32 %v1672_v41  ;;  %v2065_v34 = vmax.f32 %v2061_v23, %v2063_v52  ;;  %v1682_v20 = vmul.f32 1.442695, %v1651_v12 }
 0x411   : > { %v1278_v6 = vrot.slane %v1277_v56, 4  ;;  %v2064_v4 = vmax.f32 %v2057_v25, %v2059_v22  ;;  %v4295_v38 = vpop.eup %3453  ;;  %3473 = vpow2.f32 %v1674_v45  ;;  %v1684_v28 = vsel %vm724_vm3, %v4293_v42, 0.0 }
 0x412   : > { %v4299_v48 = vpop.eup %3455  ;;  %3475 = vpow2.f32 %v1676_v61  ;;  %v1685_v47 = vsel %vm724_vm3, %v4295_v38, 0.0 }
 0x413   : > { %v1279_v46 = vadd.f32 %v1278_v6, %v1277_v56  ;;  %v2066_v32 = vmax.f32 %v2064_v4, %v2065_v34  ;;  %v4303_v39 = vpop.eup %3457  ;;  %3477 = vpow2.f32 %v1678_v33  ;;  %v1686_v55 = vadd.f32 %v1685_v47, %v1684_v28 }
 0x414   : > { %3479 = vpow2.f32 %v1680_v57  ;;  %v1687_v12 = vsel %vm724_vm3, %v4299_v48, 0.0  ;;  %v4307_v41 = vpop.eup %3459  ;;  %v1689_v7 = vsel %vm724_vm3, %v4303_v39, 0.0 }
 0x415   : > { %v1280_v30 = vrot.slane %v1279_v46, 2  ;;  %v2067_v58 = vrot.slane %v2066_v32, 4  ;;  %v1688_v16 = vadd.f32 %v1687_v12, %v1686_v55  ;;  %v4309_v43 = vpop.eup %3461  ;;  %3481 = vpow2.f32 %v1682_v20 }
 0x416   : > { %v4313_v2 = vpop.eup %3463  ;;  %v1691_v24 = vsel %vm724_vm3, %v4307_v41, 0.0  ;;  %v1693_v61 = vsel %vm724_vm3, %v4309_v43, 0.0 }
 0x417   : > { %v1281_v60 = vadd.f32 %v1280_v30, %v1279_v46  ;;  %v2068_v9 = vmax.f32 %v2066_v32, %v2067_v58  ;;  %v1690_v3 = vadd.f32 %v1689_v7, %v1688_v16  ;;  %v1695_v25 = vsel %vm724_vm3, %v4313_v2, 0.0 }
 0x418   : > { %v4317_v8 = vpop.eup %3465 }
 0x419   : > { %v1282_v19 = vrot.slane %v1281_v60, 1  ;;  %v2069_v5 = vrot.slane %v2068_v9, 2  ;;  %v1692_v63 = vadd.f32 %v1691_v24, %v1690_v3  ;;  %v1697_v34 = vsel %vm724_vm3, %v4317_v8, 0.0 }
 0x41a   : > { %v4319_v52 = vpop.eup %3467 }
 0x41b   : > { %v1283_v45 = vadd.f32 %v1282_v19, %v1281_v60  ;;  %v2070_v27 = vmax.f32 %v2068_v9, %v2069_v5  ;;  %v1694_v56 = vadd.f32 %v1693_v61, %v1692_v63  ;;  %v4323_v23 = vpop.eup %3469  ;;  %v1699_v47 = vsel %vm724_vm3, %v4319_v52, 0.0 }
 0x41c   : > { %v1701_v60 = vsel %vm724_vm3, %v4323_v23, 0.0 }
 0x41d   : > { %3483 = vrcp.f32 %v1283_v45  ;;  %v2071_v22 = vrot.slane %v2070_v27, 1  ;;  %v4327_v33 = vpop.eup %3471  ;;  %v1696_v57 = vadd.f32 %v1695_v25, %v1694_v56 }
 0x41e   : > { %v4329_v6 = vpop.eup %3473  ;;  %v1703_v7 = vsel %vm724_vm3, %v4327_v33, 0.0 }
 0x41f   : > { %v4333_v4 = vmax.f32 %v2070_v27, %v2071_v22  ;;  %v4335_v20 = vpop.eup %3475  ;;  %v1698_v28 = vadd.f32 %v1697_v34, %v1696_v57  ;;  %v1705_v3 = vsel %vm724_vm3, %v4329_v6, 0.0 }
 0x420   : > { %v4337_v46 = vpop.eup %3477 }
 0x421   : > { %v2073_v32 = vsub.f32 %v4091_v10, %v4333_v4  ;;  %v4343_v55 = vpop.eup %3479  ;;  %v1700_v30 = vadd.f32 %v1699_v47, %v1698_v28  ;;  %v2074_v12 = vsub.f32 %v4106_v53, %v4333_v4  ;;  %v2075_v58 = vsub.f32 %v4085_v0, %v4333_v4 }
 0x422   : > { %v2076_v16 = vsub.f32 %v4095_v36, %v4333_v4  ;;  %v4355_v9 = vpop.eup %3481  ;;  %v1707_v53 = vsel %vm724_vm3, %v4335_v20, 0.0  ;;  %v2077_v0 = vsub.f32 %v4126_v59, %v4333_v4  ;;  %v1709_v36 = vsel %vm724_vm3, %v4337_v46, 0.0 }
 0x423   : > { %v1702_v10 = vadd.f32 %v1701_v60, %v1700_v30  ;;  %v1711_v19 = vsel %vm724_vm3, %v4343_v55, 0.0  ;;  %v2078_v24 = vsub.f32 %v4152_v50, %v4333_v4  ;;  %v2089_v5 = vmul.f32 1.442695, %v2073_v32 }
 0x424   : > { %v2091_v45 = vmul.f32 1.442695, %v2074_v12  ;;  %v2093_v61 = vmul.f32 1.442695, %v2075_v58  ;;  %v2095_v27 = vmul.f32 1.442695, %v2076_v16  ;;  %v2079_v59 = vsub.f32 %v4115_v13, %v4333_v4 }
 0x425   : > { %v1704_v63 = vadd.f32 %v1703_v7, %v1702_v10  ;;  %v1713_v56 = vsel %vm724_vm3, %v4355_v9, 0.0  ;;  %v2080_v25 = vsub.f32 %v4135_v15, %v4333_v4  ;;  %3485 = vpow2.f32 %v2089_v5 }
 0x426   : > { %v2081_v57 = vsub.f32 %v4203_v35, %v4333_v4  ;;  %3487 = vpow2.f32 %v2091_v45  ;;  %v2097_v50 = vmul.f32 1.442695, %v2077_v0  ;;  %v2082_v34 = vsub.f32 %v4239_v37, %v4333_v4 }
 0x427   : > { %v1706_v22 = vadd.f32 %v1705_v3, %v1704_v63  ;;  %v2083_v28 = vsub.f32 %v4179_v21, %v4333_v4  ;;  %v2084_v47 = vsub.f32 %v4223_v51, %v4333_v4  ;;  %3489 = vpow2.f32 %v2093_v61 }
 0x428   : > { %v2085_v15 = vsub.f32 %v4257_v26, %v4333_v4  ;;  %3491 = vpow2.f32 %v2095_v27  ;;  %v2099_v30 = vmul.f32 1.442695, %v2078_v24  ;;  %v2086_v35 = vsub.f32 %v4280_v44, %v4333_v4 }
 0x429   : > { %v1708_v32 = vadd.f32 %v1707_v53, %v1706_v22  ;;  %v2087_v37 = vsub.f32 %v4247_v31, %v4333_v4  ;;  %v2101_v12 = vmul.f32 1.442695, %v2079_v59  ;;  %3493 = vpow2.f32 %v2097_v50  ;;  %v4867_v59 = vld [vmem:[#allocation21_spill] sm:$0xff]  ;;  %v4868_v22 = vld [vmem:[#allocation32_spill] sm:$0xff] }
 0x42a   : > { %v3484_v13 = vpop.eup %3483  ;;  %v2103_v60 = vmul.f32 1.442695, %v2080_v25  ;;  %3495 = vpow2.f32 %v2099_v30  ;;  %v2105_v53 = vmul.f32 1.442695, %v2081_v57  ;;  %v2107_v24 = vmul.f32 1.442695, %v2082_v34 }
 0x42b   : > { %v1285_v21 = vmul.f32 %v3484_v13, %v4098_v17  ;;  %v1710_v58 = vadd.f32 %v1709_v36, %v1708_v32  ;;  %v1286_v51 = vmul.f32 %v3484_v13, %v4102_v29  ;;  %v1287_v16 = vmul.f32 %v3484_v13, %v4108_v40  ;;  %v4869_v50 = vld [vmem:[#allocation33_spill] sm:$0xff] }
 0x42c   : > { %v1288_v26 = vmul.f32 %v3484_v13, %v4113_v11  ;;  %v1289_v7 = vmul.f32 %v3484_v13, %v4118_v14  ;;  %v1290_v10 = vmul.f32 %v3484_v13, %v4124_v49  ;;  %v1291_v31 = vmul.f32 %v3484_v13, %v4128_v54  ;;  %v4862_v11 = vld [vmem:[#allocation28_spill] sm:$0xff]  ;;  %v4864_v54 = vld [vmem:[#allocation30_spill] sm:$0xff] }
 0x42d   : > { %v1712_v44 = vadd.f32 %v1711_v19, %v1710_v58  ;;  %v1301_v3 = vpack.c.bf16 %v1286_v51, %v1285_v21  ;;  %v1292_v36 = vmul.f32 %v3484_v13, %v4133_v18  ;;  %3497 = vpow2.f32 %v2101_v12  ;;  %v4863_v19 = vld [vmem:[#allocation29_spill] sm:$0xff]  ;;  %v4865_v18 = vld [vmem:[#allocation20_spill] sm:$0xff]  ;;  %v4870_v21 = vld [vmem:[#allocation34_spill] sm:$0xff] }
 0x42e   : > { %v1302_v17 = vpack.c.bf16 %v1288_v26, %v1287_v16  ;;  %v1303_v0 = vpack.c.bf16 %v1290_v10, %v1289_v7  ;;  %v1293_v40 = vmul.f32 %v3484_v13, %v4138_v1  ;;  %v1294_v14 = vmul.f32 %v3484_v13, %v4862_v11  ;;  %v4866_v1 = vld [vmem:[#allocation31_spill] sm:$0xff] }
 0x42f   : > { %v1714_v29 = vadd.f32 %v1713_v56, %v1712_v44  ;;  %3176 = vmatprep.mubr.msk.bf16.mxu0 %vm724_vm3, %v1301_v3  ;;  %v1304_v49 = vpack.c.bf16 %v1292_v36, %v1291_v31  ;;  %v4402_v5 = vmul.f32 %v3484_v13, %v4863_v19  ;;  %v4405_v63 = vmul.f32 %v3484_v13, %v4864_v54  ;;  %v4871_v3 = vld [vmem:[#allocation22_spill] sm:$0xff] }
 0x430   : > { %3177 = vmatmul.mubr.msk.bf16.vlgmr.msra.gmra.mxu0 %vm724_vm3, %v1302_v17  ;;  %3499 = vpow2.f32 %v2103_v60  ;;  %v1305_v61 = vpack.c.bf16 %v1294_v14, %v1293_v40  ;;  %v1297_v27 = vmul.f32 %v3484_v13, %v4866_v1  ;;  %v2109_v56 = vmul.f32 1.442695, %v2083_v28  ;;  %v4872_v14 = vld [vmem:[#allocation23_spill] sm:$0xff] }
 0x431   : > { %v1715_v45 = vrot.slane %v1714_v29, 4  ;;  %3217 = vmatpush3.bf16.msra.mxu0 %v4865_v18  ;;  %3180 = vmatprep.mubr.msk.bf16.mxu0 %vm724_vm3, %v1303_v0  ;;  %v1306_v25 = vpack.c.bf16 %v4405_v63, %v4402_v5  ;;  %v1298_v57 = vmul.f32 %v3484_v13, %v4868_v22  ;;  %v4415_v34 = vmul.f32 %v3484_v13, %v4869_v50 }
 0x432   : > { %3218 = vmatprep.subr.bf16.mxu0 %v4867_v59  ;;  %v4417_v32 = vpop.eup %3485  ;;  %3501 = vpow2.f32 %v2105_v53  ;;  %v2111_v12 = vmul.f32 1.442695, %v2084_v47  ;;  %v4420_v58 = vmul.f32 %v3484_v13, %v4870_v21  ;;  %v2113_v28 = vmul.f32 1.442695, %v2085_v15 }
 0x433   : > { %v1716_v30 = vadd.f32 %v1715_v45, %v1714_v29  ;;  %v4422_v51 = vpop.eup %3487  ;;  %v2115_v16 = vmul.f32 1.442695, %v2086_v35  ;;  %v2121_v60 = vsel %vm724_vm3, %v4417_v32, 0.0  ;;  %v1307_v26 = vpack.c.bf16 %v1298_v57, %v1297_v27  ;;  %v4873_v45 = vld [vmem:[#allocation24_spill] sm:$0xff] }
 0x434   : > { %v4426_v7 = vpop.eup %3489  ;;  %3503 = vpow2.f32 %v2107_v24  ;;  %v2122_v44 = vsel %vm724_vm3, %v4422_v51, 0.0  ;;  %v1308_v47 = vpack.c.bf16 %v4420_v58, %v4415_v34  ;;  %v2117_v15 = vmul.f32 1.442695, %v2087_v37 }
 0x435   : > { %v1717_v10 = vrot.slane %v1716_v30, 2  ;;  %3219 = vmatpush3.bf16.msra.mxu0 %v4867_v59  ;;  %v4433_v13 = vpop.eup %3491  ;;  %3505 = vpow2.f32 %v2109_v56  ;;  %v2123_v35 = vadd.f32 %v2122_v44, %v2121_v60  ;;  %v2124_v53 = vsel %vm724_vm3, %v4426_v7, 0.0 }
 0x436   : > { %3220 = vmatprep.subr.bf16.mxu0 %v4871_v3  ;;  %3507 = vpow2.f32 %v2111_v12  ;;  %v4438_v17 = vpop.eup %3493  ;;  %v2088_v29 = vsub.f32 %v4265_v62, %v4333_v4  ;;  %v2126_v37 = vsel %vm724_vm3, %v4433_v13, 0.0 }
 0x437   : > { %v1718_v31 = vadd.f32 %v1717_v10, %v1716_v30  ;;  %3509 = vpow2.f32 %v2113_v28  ;;  %v2125_v0 = vadd.f32 %v2124_v53, %v2123_v35  ;;  %v4447_v40 = vpop.eup %3495 }
 0x438   : > { %3181 = vmatmul.mubr.msk.bf16.gmra.mxu0 %vm724_vm3, %v1304_v49  ;;  %3511 = vpow2.f32 %v2115_v16  ;;  %v2128_v49 = vsel %vm724_vm3, %v4438_v17, 0.0  ;;  %v2119_v4 = vmul.f32 1.442695, %v2088_v29  ;;  %v2130_v5 = vsel %vm724_vm3, %v4447_v40, 0.0 }
 0x439   : > { %v1719_v36 = vrot.slane %v1718_v31, 1  ;;  %3184 = vmatprep.mubr.msk.bf16.mxu0 %vm724_vm3, %v1305_v61  ;;  %3221 = vmatpush3.bf16.msra.mxu0 %v4871_v3  ;;  %3513 = vpow2.f32 %v2117_v15  ;;  %v2127_v11 = vadd.f32 %v2126_v37, %v2125_v0 }
 0x43a   : > { %3222 = vmatprep.subr.bf16.mxu0 %v4872_v14  ;;  %v4452_v19 = vpop.eup %3497 }
 0x43b   : > { %v1720_v24 = vadd.f32 %v1719_v36, %v1718_v31  ;;  %v2129_v62 = vadd.f32 %v2128_v49, %v2127_v11  ;;  %v2132_v18 = vsel %vm724_vm3, %v4452_v19, 0.0 }
 0x43d   : > { %3515 = vrcp.f32 %v1720_v24  ;;  %3223 = vmatpush3.bf16.msra.mxu0 %v4872_v14  ;;  %v4457_v54 = vpop.eup %3499  ;;  %v2131_v63 = vadd.f32 %v2130_v5, %v2129_v62 }
 0x43e   : > { %3264 = vmatprep.subr.bf16.mxu0 %v4873_v45  ;;  %3517 = vpow2.f32 %v2119_v4  ;;  %v2134_v27 = vsel %vm724_vm3, %v4457_v54, 0.0 }
 0x43f   : > { %v4462_v61 = vpop.eup %3501  ;;  %v2133_v1 = vadd.f32 %v2132_v18, %v2131_v63 }
 0x440   : > { %3185 = vmatmul.mubr.msk.bf16.gmra.mxu0 %vm724_vm3, %v1306_v25  ;;  %v2136_v57 = vsel %vm724_vm3, %v4462_v61, 0.0 }
 0x441   : > { %3188 = vmatprep.mubr.msk.bf16.mxu0 %vm724_vm3, %v1307_v26  ;;  %v4468_v56 = vpop.eup %3503  ;;  %v2135_v59 = vadd.f32 %v2134_v27, %v2133_v1 }
 0x442   : > { %v4470_v22 = vpop.eup %3505  ;;  %v2138_v25 = vsel %vm724_vm3, %v4468_v56, 0.0 }
 0x443   : > { %v4474_v50 = vpop.eup %3507  ;;  %v2137_v34 = vadd.f32 %v2136_v57, %v2135_v59  ;;  %v2140_v28 = vsel %vm724_vm3, %v4470_v22, 0.0  ;;  %v4875_v59 = vld [vmem:[#allocation26_spill] sm:$0xff] }
 0x444   : > { %v4476_v30 = vpop.eup %3509  ;;  %v2142_v60 = vsel %vm724_vm3, %v4474_v50, 0.0 }
 0x445   : > { %v4480_v12 = vpop.eup %3511  ;;  %v2139_v21 = vadd.f32 %v2138_v25, %v2137_v34  ;;  %v2144_v44 = vsel %vm724_vm3, %v4476_v30, 0.0 }
 0x446   : > { %v4482_v58 = vpop.eup %3513  ;;  %v2146_v15 = vsel %vm724_vm3, %v4480_v12, 0.0 }
 0x447   : > { %v2141_v16 = vadd.f32 %v2140_v28, %v2139_v21  ;;  %v2148_v35 = vsel %vm724_vm3, %v4482_v58, 0.0 }
 0x448   : > { %3189 = vmatmul.mubr.msk.bf16.gmra.mxu0 %vm724_vm3, %v1308_v47 }
 0x449   : > { %v2143_v10 = vadd.f32 %v2142_v60, %v2141_v16 }
 0x44a   : > { %v3516_v26 = vpop.eup %3515 }
 0x44b   : > { %v1722_v3 = vmul.f32 %v3516_v26, %v4293_v42  ;;  %v1723_v31 = vmul.f32 %v3516_v26, %v4295_v38  ;;  %v1724_v47 = vmul.f32 %v3516_v26, %v4299_v48  ;;  %v1725_v53 = vmul.f32 %v3516_v26, %v4303_v39  ;;  %v3518_v42 = vpop.eup %3517 }
 0x44c   : > { %v2145_v0 = vadd.f32 %v2144_v44, %v2143_v10  ;;  %v1726_v36 = vmul.f32 %v3516_v26, %v4307_v41  ;;  %v1727_v29 = vmul.f32 %v3516_v26, %v4309_v43  ;;  %v1728_v37 = vmul.f32 %v3516_v26, %v4313_v2 }
 0x44d   : > { %v1738_v11 = vpack.c.bf16 %v1723_v31, %v1722_v3  ;;  %v1739_v14 = vpack.c.bf16 %v1725_v53, %v1724_v47  ;;  %v1729_v24 = vmul.f32 %v3516_v26, %v4317_v8  ;;  %v1730_v49 = vmul.f32 %v3516_v26, %v4319_v52 }
 0x44e   : > { %v2147_v62 = vadd.f32 %v2146_v15, %v2145_v0  ;;  %v1740_v38 = vpack.c.bf16 %v1727_v29, %v1726_v36  ;;  %v1731_v48 = vmul.f32 %v3516_v26, %v4323_v23  ;;  %v1732_v39 = vmul.f32 %v3516_v26, %v4327_v33 }
 0x44f   : > { %3224 = vmatprep.mubr.msk.bf16.mxu0 %vm724_vm3, %v1738_v11  ;;  %v1741_v41 = vpack.c.bf16 %v1729_v24, %v1728_v37  ;;  %v1733_v43 = vmul.f32 %v3516_v26, %v4329_v6  ;;  %v1734_v2 = vmul.f32 %v3516_v26, %v4335_v20  ;;  %v1735_v4 = vmul.f32 %v3516_v26, %v4337_v46  ;;  %v4874_v20 = vld [vmem:[#allocation25_spill] sm:$0xff] }
 0x450   : > { %v2149_v5 = vadd.f32 %v2148_v35, %v2147_v62  ;;  %3225 = vmatmul.mubr.msk.bf16.vlgmr.msra.gmra.mxu0 %vm724_vm3, %v1739_v14  ;;  %v1742_v8 = vpack.c.bf16 %v1731_v48, %v1730_v49  ;;  %v1736_v52 = vmul.f32 %v3516_v26, %v4343_v55  ;;  %v1737_v63 = vmul.f32 %v3516_v26, %v4355_v9 }
 0x451   : > { %v2150_v23 = vsel %vm724_vm3, %v3518_v42, 0.0  ;;  %3265 = vmatpush3.bf16.msra.mxu0 %v4873_v45  ;;  %3228 = vmatprep.mubr.msk.bf16.mxu0 %vm724_vm3, %v1740_v38  ;;  %v1743_v33 = vpack.c.bf16 %v1733_v43, %v1732_v39  ;;  %v1744_v6 = vpack.c.bf16 %v1735_v4, %v1734_v2  ;;  %v4876_v45 = vld [vmem:[#allocation27_spill] sm:$0xff] }
 0x452   : > { %v2151_v18 = vadd.f32 %v2150_v23, %v2149_v5  ;;  %3266 = vmatprep.subr.bf16.mxu0 %v4874_v20  ;;  %v1745_v46 = vpack.c.bf16 %v1737_v63, %v1736_v52 }
 0x454   : > { %v2152_v1 = vrot.slane %v2151_v18, 4 }
 0x455   : > { %3267 = vmatpush3.bf16.msra.mxu0 %v4874_v20 }
 0x456   : > { %v2153_v27 = vadd.f32 %v2152_v1, %v2151_v18  ;;  %3268 = vmatprep.subr.bf16.mxu0 %v4875_v59 }
 0x458   : > { %v2154_v55 = vrot.slane %v2153_v27, 2  ;;  %3229 = vmatmul.mubr.msk.bf16.gmra.mxu0 %vm724_vm3, %v1741_v41 }
 0x459   : > { %3232 = vmatprep.mubr.msk.bf16.mxu0 %vm724_vm3, %v1742_v8  ;;  %3269 = vmatpush3.bf16.msra.mxu0 %v4875_v59 }
 0x45a   : > { %v2155_v9 = vadd.f32 %v2154_v55, %v2153_v27  ;;  %3270 = vmatprep.subr.bf16.mxu0 %v4876_v45 }
 0x45c   : > { %v2156_v57 = vrot.slane %v2155_v9, 1 }
 0x45d   : > { %3271 = vmatpush3.bf16.msra.mxu0 %v4876_v45 }
 0x45e   : > { %v2157_v34 = vadd.f32 %v2156_v57, %v2155_v9 }
 0x460   : > { %3519 = vrcp.f32 %v2157_v34  ;;  %3233 = vmatmul.mubr.msk.bf16.gmra.mxu0 %vm724_vm3, %v1743_v33 }
 0x461   : > { %3236 = vmatprep.mubr.msk.bf16.mxu0 %vm724_vm3, %v1744_v6 }
 0x468   : > { %3237 = vmatmul.mubr.msk.bf16.gmra.mxu0 %vm724_vm3, %v1745_v46 }
 0x46d   : > { %v3520_v25 = vpop.eup %3519 }
 0x46e   : > { %v2159_v21 = vmul.f32 %v3520_v25, %v4417_v32  ;;  %v2160_v28 = vmul.f32 %v3520_v25, %v4422_v51  ;;  %v2171_v16 = vmul.f32 %v3520_v25, %v4476_v30  ;;  %v2172_v60 = vmul.f32 %v3520_v25, %v4480_v12 }
 0x46f   : > { %v2161_v26 = vmul.f32 %v3520_v25, %v4426_v7  ;;  %v2162_v10 = vmul.f32 %v3520_v25, %v4433_v13  ;;  %v2173_v44 = vmul.f32 %v3520_v25, %v4482_v58  ;;  %v2174_v15 = vmul.f32 %v3520_v25, %v3518_v42 }
 0x470   : > { %v2175_v35 = vpack.c.bf16 %v2160_v28, %v2159_v21  ;;  %v2181_v3 = vpack.c.bf16 %v2172_v60, %v2171_v16  ;;  %v2163_v31 = vmul.f32 %v3520_v25, %v4438_v17  ;;  %v2164_v47 = vmul.f32 %v3520_v25, %v4447_v40 }
 0x471   : > { %v2176_v32 = vpack.c.bf16 %v2162_v10, %v2161_v26  ;;  %v2182_v53 = vpack.c.bf16 %v2174_v15, %v2173_v44  ;;  %v2165_v51 = vmul.f32 %v3520_v25, %v4452_v19  ;;  %v2166_v30 = vmul.f32 %v3520_v25, %v4457_v54 }
 0x472   : > { %3272 = vmatprep.mubr.msk.bf16.mxu0 %vm724_vm3, %v2175_v35  ;;  %3284 = vmatprep.mubr.msk.bf16.mxu1 %vm724_vm3, %v2181_v3  ;;  %v2177_v7 = vpack.c.bf16 %v2164_v47, %v2163_v31  ;;  %v2167_v13 = vmul.f32 %v3520_v25, %v4462_v61  ;;  %v2168_v12 = vmul.f32 %v3520_v25, %v4468_v56 }
 0x473   : > { %3273 = vmatmul.mubr.msk.bf16.vlgmr.msra.gmra.mxu0 %vm724_vm3, %v2176_v32  ;;  %3285 = vmatmul.mubr.msk.bf16.vlgmr.msra.gmra.mxu1 %vm724_vm3, %v2182_v53  ;;  %v2178_v17 = vpack.c.bf16 %v2166_v30, %v2165_v51  ;;  %v2169_v40 = vmul.f32 %v3520_v25, %v4470_v22  ;;  %v2170_v19 = vmul.f32 %v3520_v25, %v4474_v50 }
 0x474   : > { %3276 = vmatprep.mubr.msk.bf16.mxu0 %vm724_vm3, %v2177_v7  ;;  %v2179_v54 = vpack.c.bf16 %v2168_v12, %v2167_v13 }
 0x475   : > { %v2180_v58 = vpack.c.bf16 %v2170_v19, %v2169_v40 }
 0x47b   : > { %3277 = vmatmul.mubr.msk.bf16.gmra.mxu0 %vm724_vm3, %v2178_v17 }
 0x47c   : > { %3280 = vmatprep.mubr.msk.bf16.mxu0 %vm724_vm3, %v2179_v54 }
 0x483   : > { %3281 = vmatmul.mubr.msk.bf16.gmra.mxu0 %vm724_vm3, %v2180_v58 }
 0x4f0   : > { %v3178_v61 = vpop.f32.mrf.mxu0 }
 0x4f1   : > { %2352 = vrot.lane.b32.xlu0 %v3178_v61, %s3543_s9 }
 0x4f2   : > { %v1379_v56 = vpop.f32.mrf.mxu0 }
 0x4f4   : > { %v3179_v0 = vpop.f32.mrf.mxu0 }
 0x4f5   : > { %2348 = vrot.lane.b32.xlu0 %v1379_v56, %s3543_s9  ;;  %2354 = vrot.lane.b32.xlu1 %v3179_v0, %s3543_s9 }
 0x4f6   : > { %v1382_v22 = vpop.f32.mrf.mxu0 }
 0x4f8   : > { %v3182_v50 = vpop.f32.mrf.mxu0 }
 0x4f9   : > { %2350 = vrot.lane.b32.xlu1 %v1382_v22, %s3543_s9  ;;  %2360 = vrot.lane.b32.xlu0 %v3182_v50, %s3543_s9 }
 0x4fa   : > { %v1395_v36 = vpop.f32.mrf.mxu0 }
 0x4fc   : > { %v3183_v29 = vpop.f32.mrf.mxu0 }
 0x4fd   : > { %2356 = vrot.lane.b32.xlu0 %v1395_v36, %s3543_s9  ;;  %2362 = vrot.lane.b32.xlu1 %v3183_v29, %s3543_s9 }
 0x4fe   : > { %v1398_v37 = vpop.f32.mrf.mxu0 }
 0x500   : > { %v3186_v11 = vpop.f32.mrf.mxu0 }
 0x501   : > { %2358 = vrot.lane.b32.xlu1 %v1398_v37, %s3543_s9  ;;  %2368 = vrot.lane.b32.xlu0 %v3186_v11, %s3543_s9 }
 0x502   : > { %v1411_v14 = vpop.f32.mrf.mxu0 }
 0x504   : > { %v3187_v24 = vpop.f32.mrf.mxu0 }
 0x505   : > { %2364 = vrot.lane.b32.xlu0 %v1411_v14, %s3543_s9  ;;  %2370 = vrot.lane.b32.xlu1 %v3187_v24, %s3543_s9 }
 0x506   : > { %v1414_v49 = vpop.f32.mrf.mxu0 }
 0x508   : > { %v3190_v42 = vpop.f32.mrf.mxu0 }
 0x509   : > { %2366 = vrot.lane.b32.xlu1 %v1414_v49, %s3543_s9  ;;  %2376 = vrot.lane.b32.xlu0 %v3190_v42, %s3543_s9 }
 0x50a   : > { %v1427_v62 = vpop.f32.mrf.mxu0 }
 0x50c   : > { %v3191_v38 = vpop.f32.mrf.mxu0 }
 0x50d   : > { %2372 = vrot.lane.b32.xlu0 %v1427_v62, %s3543_s9  ;;  %2378 = vrot.lane.b32.xlu1 %v3191_v38, %s3543_s9 }
 0x50e   : > { %v1430_v48 = vpop.f32.mrf.mxu0 }
 0x510   : > { %v3226_v39 = vpop.f32.mrf.mxu0 }
 0x511   : > { %2374 = vrot.lane.b32.xlu1 %v1430_v48, %s3543_s9  ;;  %2416 = vrot.lane.b32.xlu0 %v3226_v39, %s3544_s10  ;;  %v4877_v39 = vld [vmem:[#allocation4_spill] sm:$0xff] }
 0x512   : > { %v1816_v41 = vpop.f32.mrf.mxu0 }
 0x514   : > { %v3227_v43 = vpop.f32.mrf.mxu0 }
 0x515   : > { %2412 = vrot.lane.b32.xlu0 %v1816_v41, %s3544_s10  ;;  %2418 = vrot.lane.b32.xlu1 %v3227_v43, %s3544_s10  ;;  %v2318_v43 = vld [vmem:[#allocation3 + $0x10] sm:$0xff] }
 0x516   : > { %v1819_v2 = vpop.f32.mrf.mxu0 }
 0x518   : > { %v3230_v4 = vpop.f32.mrf.mxu0 }
 0x519   : > { %2414 = vrot.lane.b32.xlu1 %v1819_v2, %s3544_s10  ;;  %2424 = vrot.lane.b32.xlu0 %v3230_v4, %s3544_s10 }
 0x51a   : > { %v1832_v5 = vpop.f32.mrf.mxu0 }
 0x51c   : > { %v3231_v8 = vpop.f32.mrf.mxu0 }
 0x51d   : > { %2420 = vrot.lane.b32.xlu0 %v1832_v5, %s3544_s10  ;;  %2426 = vrot.lane.b32.xlu1 %v3231_v8, %s3544_s10 }
 0x51e   : > { %v1835_v52 = vpop.f32.mrf.mxu0 }
 0x520   : > { %v3234_v63 = vpop.f32.mrf.mxu0 }
 0x521   : > { %2422 = vrot.lane.b32.xlu1 %v1835_v52, %s3544_s10  ;;  %2432 = vrot.lane.b32.xlu0 %v3234_v63, %s3544_s10  ;;  %v4878_v52 = vld [vmem:[#allocation5_spill] sm:$0xff] }
 0x522   : > { %v1848_v23 = vpop.f32.mrf.mxu0 }
 0x524   : > { %v3235_v33 = vpop.f32.mrf.mxu0 }
 0x525   : > { %2428 = vrot.lane.b32.xlu0 %v1848_v23, %s3544_s10  ;;  %2434 = vrot.lane.b32.xlu1 %v3235_v33, %s3544_s10  ;;  %v4879_v23 = vld [vmem:[#allocation6_spill] sm:$0xff] }
 0x526   : > { %v1851_v6 = vpop.f32.mrf.mxu0 }
 0x528   : > { %v3238_v18 = vpop.f32.mrf.mxu0 }
 0x529   : > { %2430 = vrot.lane.b32.xlu1 %v1851_v6, %s3544_s10  ;;  %2440 = vrot.lane.b32.xlu0 %v3238_v18, %s3544_s10  ;;  %v2316_v6 = vld [vmem:[#allocation3] sm:$0xff]  ;;  %v2319_v18 = vld [vmem:[#allocation3 + $0x18] sm:$0xff] }
 0x52a   : > { %v1864_v20 = vpop.f32.mrf.mxu0 }
 0x52c   : > { %v3239_v46 = vpop.f32.mrf.mxu0 }
 0x52d   : > { %2436 = vrot.lane.b32.xlu0 %v1864_v20, %s3544_s10  ;;  %2442 = vrot.lane.b32.xlu1 %v3239_v46, %s3544_s10 }
 0x52e   : > { %v1867_v1 = vpop.f32.mrf.mxu0 }
 0x531   : > { %2438 = vrot.lane.b32.xlu1 %v1867_v1, %s3544_s10 }
 0x533   : > { %v3274_v27 = vpop.f32.mrf.mxu0  ;;  %v3286_v59 = vpop.f32.mrf.mxu1 }
 0x534   : > { %2480 = vrot.lane.b32.xlu0 %v3274_v27, %s3545_s11 }
 0x535   : > { %v2253_v55 = vpop.f32.mrf.mxu0  ;;  %v2301_v9 = vpop.f32.mrf.mxu1 }
 0x537   : > { %v3275_v45 = vpop.f32.mrf.mxu0  ;;  %v3287_v34 = vpop.f32.mrf.mxu1 }
 0x538   : > { %2476 = vrot.lane.b32.xlu0 %v2253_v55, %s3545_s11  ;;  %2482 = vrot.lane.b32.xlu1 %v3275_v45, %s3545_s11 }
 0x539   : > { %v2256_v57 = vpop.f32.mrf.mxu0  ;;  %v2304_v28 = vpop.f32.mrf.mxu1 }
 0x53b   : > { %v3278_v25 = vpop.f32.mrf.mxu0 }
 0x53c   : > { %2500 = vrot.lane.b32.xlu0 %v2301_v9, %s3545_s11  ;;  %2478 = vrot.lane.b32.xlu1 %v2256_v57, %s3545_s11  ;;  %v4880_v57 = vld [vmem:[#allocation7_spill] sm:$0xff] }
 0x53d   : > { %v2269_v21 = vpop.f32.mrf.mxu0 }
 0x53f   : > { %v3279_v16 = vpop.f32.mrf.mxu0 }
 0x540   : > { %2502 = vrot.lane.b32.xlu1 %v2304_v28, %s3545_s11  ;;  %2488 = vrot.lane.b32.xlu0 %v3278_v25, %s3545_s11  ;;  %v4881_v25 = vld [vmem:[#allocation17_spill] sm:$0xff]  ;;  %v2328_v28 = vld [vmem:[#allocation3 + $0x60] sm:$0xff] }
 0x541   : > { %v2272_v60 = vpop.f32.mrf.mxu0 }
 0x543   : > { %v3282_v26 = vpop.f32.mrf.mxu0 }
 0x544   : > { %2484 = vrot.lane.b32.xlu0 %v2269_v21, %s3545_s11  ;;  %2490 = vrot.lane.b32.xlu1 %v3279_v16, %s3545_s11  ;;  %v2317_v16 = vld [vmem:[#allocation3 + $0x8] sm:$0xff] }
 0x545   : > { %v2285_v10 = vpop.f32.mrf.mxu0 }
 0x547   : > { %v3283_v44 = vpop.f32.mrf.mxu0 }
 0x548   : > { %2486 = vrot.lane.b32.xlu1 %v2272_v60, %s3545_s11  ;;  %2496 = vrot.lane.b32.xlu0 %v3282_v26, %s3545_s11 }
 0x549   : > { %v2288_v15 = vpop.f32.mrf.mxu0 }
 0x54c   : > { %2492 = vrot.lane.b32.xlu0 %v2285_v10, %s3545_s11  ;;  %2498 = vrot.lane.b32.xlu1 %v3283_v44, %s3545_s11 }
 0x550   : > { %2504 = vrot.lane.b32.xlu0 %v3286_v59, %s3545_s11  ;;  %2494 = vrot.lane.b32.xlu1 %v2288_v15, %s3545_s11 }
 0x554   : > { %2506 = vrot.lane.b32.xlu1 %v3287_v34, %s3545_s11 }
 0x563   : > { %v2353_v35 = vpop.permute.xlu0 %2352 }
 0x564   : > { %v2526_v41 = vsel %vm590_vm2, %v4877_v39, %v2353_v35 }
 0x567   : > { %v2349_v3 = vpop.permute.xlu0 %2348  ;;  %v2355_v31 = vpop.permute.xlu1 %2354 }
 0x568   : > { %v2524_v63 = vsel %vm590_vm2, %v4878_v52, %v2349_v3  ;;  %v2527_v33 = vsel %vm590_vm2, %v4879_v23, %v2355_v31  ;;  %v2320_v52 = vld [vmem:[#allocation3 + $0x20] sm:$0xff] }
 0x56b   : > { %v4582_v47 = vpop.permute.xlu0 %2360  ;;  %v2351_v32 = vpop.permute.xlu1 %2350 }
 0x56c   : > { %v2525_v34 = vsel %vm590_vm2, %v4880_v57, %v2351_v32  ;;  %v4882_v32 = vld [vmem:[#allocation8_spill] sm:$0xff] }
 0x56f   : > { %v4584_v53 = vpop.permute.xlu0 %2356  ;;  %v4586_v51 = vpop.permute.xlu1 %2362 }
 0x573   : > { %v4588_v30 = vpop.permute.xlu0 %2368  ;;  %v4590_v7 = vpop.permute.xlu1 %2358 }
 0x577   : > { %v4592_v13 = vpop.permute.xlu0 %2364  ;;  %v4594_v12 = vpop.permute.xlu1 %2370 }
 0x57b   : > { %v4596_v17 = vpop.permute.xlu0 %2376  ;;  %v4598_v40 = vpop.permute.xlu1 %2366 }
 0x57f   : > { %v2373_v19 = vpop.permute.xlu0 %2372  ;;  %v4600_v54 = vpop.permute.xlu1 %2378 }
 0x580   : > { %v2536_v21 = vsel %vm590_vm2, %v4881_v25, %v2373_v19  ;;  %v2530_v19 = vsel %vm590_vm2, %v4882_v32, %v4582_v47  ;;  %v4890_v32 = vld [vmem:[#allocation16_spill] sm:$0xff] }
 0x583   : > { %v2417_v58 = vpop.permute.xlu0 %2416  ;;  %v2375_v61 = vpop.permute.xlu1 %2374 }
 0x584   : > { %v2543_v2 = vsel %vm2540_vm4, %v2526_v41, %v2417_v58  ;;  %v4883_v58 = vld [vmem:[#allocation19_spill] sm:$0xff] }
 0x587   : > { %v2413_v56 = vpop.permute.xlu0 %2412  ;;  %v2419_v0 = vpop.permute.xlu1 %2418 }
 0x588   : > { %v2541_v20 = vsel %vm2540_vm4, %v2524_v63, %v2413_v56  ;;  %v2544_v46 = vsel %vm2540_vm4, %v2527_v33, %v2419_v0  ;;  %v2537_v56 = vsel %vm590_vm2, %v4883_v58, %v2375_v61  ;;  %v2322_v0 = vld [vmem:[#allocation3 + $0x30] sm:$0xff]  ;;  %v4884_v61 = vld [vmem:[#allocation9_spill] sm:$0xff]  ;;  %v2323_v63 = vld [vmem:[#allocation3 + $0x38] sm:$0xff] }
 0x589   : > { %v2330_v58 = vld [vmem:[#allocation3 + $0x70] sm:$0xff] }
 0x58b   : > { %v2425_v22 = vpop.permute.xlu0 %2424  ;;  %v2415_v50 = vpop.permute.xlu1 %2414 }
 0x58c   : > { %v2542_v60 = vsel %vm2540_vm4, %v2525_v34, %v2415_v50  ;;  %v2329_v50 = vld [vmem:[#allocation3 + $0x68] sm:$0xff] }
 0x58f   : > { %v4602_v36 = vpop.permute.xlu0 %2420  ;;  %v4604_v29 = vpop.permute.xlu1 %2426 }
 0x593   : > { %v4606_v37 = vpop.permute.xlu0 %2432  ;;  %v4608_v11 = vpop.permute.xlu1 %2422 }
 0x597   : > { %v4610_v14 = vpop.permute.xlu0 %2428  ;;  %v4612_v24 = vpop.permute.xlu1 %2434 }
 0x59b   : > { %v4614_v49 = vpop.permute.xlu0 %2440  ;;  %v4616_v42 = vpop.permute.xlu1 %2430 }
 0x59f   : > { %v4618_v62 = vpop.permute.xlu1 %2442  ;;  %v2437_v38 = vpop.permute.xlu0 %2436 }
 0x5a0   : > { %v2553_v26 = vsel %vm2540_vm4, %v2536_v21, %v2437_v38  ;;  %v2547_v38 = vsel %vm2540_vm4, %v2530_v19, %v2425_v22  ;;  %v4885_v22 = vld [vmem:[#allocation10_spill] sm:$0xff]  ;;  %v2538_v19 = vsel %vm590_vm2, %v4890_v32, %v4596_v17 }
 0x5a3   : > { %v2439_v48 = vpop.permute.xlu1 %2438 }
 0x5a4   : > { %v2554_v39 = vsel %vm2540_vm4, %v2537_v56, %v2439_v48  ;;  %v2531_v48 = vsel %vm590_vm2, %v4885_v22, %v4586_v51  ;;  %v2325_v56 = vld [vmem:[#allocation3 + $0x48] sm:$0xff] }
 0x5a5   : > { %v2548_v33 = vsel %vm2540_vm4, %v2531_v48, %v4604_v29 }
 0x5a6   : > { %v2481_v4 = vpop.permute.xlu0 %2480 }
 0x5a7   : > { %v2560_v5 = vsel %vm2557_vm5, %v2543_v2, %v2481_v4 }
 0x5a8   : > { %v2576_v8 = vadd.f32 %v2560_v5, %v2318_v43 }
 0x5aa   : > { %2593 = vst.msk [vmem:[#allocation3 + $0x10] sm:$0xff] %vm2590_vm6, %v2576_v8  ;;  %v2477_v1 = vpop.permute.xlu0 %2476  ;;  %v2483_v27 = vpop.permute.xlu1 %2482  ;;  %v2528_v8 = vsel %vm590_vm2, %v4884_v61, %v4584_v53 }
 0x5ab   : > { %v2558_v59 = vsel %vm2557_vm5, %v2541_v20, %v2477_v1  ;;  %v2561_v55 = vsel %vm2557_vm5, %v2544_v46, %v2483_v27  ;;  %v2545_v23 = vsel %vm2540_vm4, %v2528_v8, %v4602_v36  ;;  %v4886_v1 = vld [vmem:[#allocation12_spill] sm:$0xff]  ;;  %v4887_v36 = vld [vmem:[#allocation11_spill] sm:$0xff] }
 0x5ac   : > { %v2574_v9 = vadd.f32 %v2558_v59, %v2316_v6  ;;  %v2577_v45 = vadd.f32 %v2561_v55, %v2319_v18  ;;  %v2534_v27 = vsel %vm590_vm2, %v4886_v1, %v4588_v30  ;;  %v2529_v29 = vsel %vm590_vm2, %v4887_v36, %v4590_v7  ;;  %v2326_v59 = vld [vmem:[#allocation3 + $0x50] sm:$0xff]  ;;  %v2321_v55 = vld [vmem:[#allocation3 + $0x28] sm:$0xff] }
 0x5ae   : > { %2591 = vst.msk [vmem:[#allocation3] sm:$0xff] %vm2590_vm6, %v2574_v9  ;;  %2594 = vst.msk [vmem:[#allocation3 + $0x18] sm:$0xff] %vm2590_vm6, %v2577_v45  ;;  %v2501_v10 = vpop.permute.xlu0 %2500  ;;  %v2479_v44 = vpop.permute.xlu1 %2478  ;;  %v2551_v9 = vsel %vm2540_vm4, %v2534_v27, %v4606_v37  ;;  %v2546_v45 = vsel %vm2540_vm4, %v2529_v29, %v4608_v11  ;;  %v4889_v37 = vld [vmem:[#allocation14_spill] sm:$0xff] }
 0x5af   : > { %v2570_v15 = vsel %vm2557_vm5, %v2553_v26, %v2501_v10  ;;  %v2559_v35 = vsel %vm2557_vm5, %v2542_v60, %v2479_v44  ;;  %v2535_v11 = vsel %vm590_vm2, %v4889_v37, %v4594_v12  ;;  %v2324_v60 = vld [vmem:[#allocation3 + $0x40] sm:$0xff]  ;;  %v2327_v26 = vld [vmem:[#allocation3 + $0x58] sm:$0xff] }
 0x5b0   : > { %v2586_v3 = vadd.f32 %v2570_v15, %v2328_v28  ;;  %v2575_v31 = vadd.f32 %v2559_v35, %v2317_v16  ;;  %v4888_v28 = vld [vmem:[#allocation13_spill] sm:$0xff]  ;;  %v2552_v44 = vsel %vm2540_vm4, %v2535_v11, %v4612_v24 }
 0x5b1   : > { %v2532_v16 = vsel %vm590_vm2, %v4888_v28, %v4592_v13 }
 0x5b2   : > { %2603 = vst.msk [vmem:[#allocation3 + $0x60] sm:$0xff] %vm2590_vm6, %v2586_v3  ;;  %2592 = vst.msk [vmem:[#allocation3 + $0x8] sm:$0xff] %vm2590_vm6, %v2575_v31  ;;  %v2489_v41 = vpop.permute.xlu0 %2488  ;;  %v2503_v43 = vpop.permute.xlu1 %2502  ;;  %v2549_v10 = vsel %vm2540_vm4, %v2532_v16, %v4610_v14  ;;  %v4891_v14 = vld [vmem:[#allocation15_spill] sm:$0xff] }
 0x5b3   : > { %v2564_v2 = vsel %vm2557_vm5, %v2547_v38, %v2489_v41  ;;  %v2571_v4 = vsel %vm2557_vm5, %v2554_v39, %v2503_v43  ;;  %v2533_v24 = vsel %vm590_vm2, %v4891_v14, %v4598_v40 }
 0x5b4   : > { %v2580_v47 = vadd.f32 %v2564_v2, %v2322_v0  ;;  %v2587_v5 = vadd.f32 %v2571_v4, %v2329_v50  ;;  %v2555_v0 = vsel %vm2540_vm4, %v2538_v19, %v4614_v49  ;;  %v2550_v50 = vsel %vm2540_vm4, %v2533_v24, %v4616_v42  ;;  %v4892_v2 = vld [vmem:[#allocation18_spill] sm:$0xff]  ;;  %v2331_v49 = vld [vmem:[#allocation3 + $0x78] sm:$0xff] }
 0x5b5   : > { %v2539_v4 = vsel %vm590_vm2, %v4892_v2, %v4600_v54 }
 0x5b6   : > { %2597 = vst.msk [vmem:[#allocation3 + $0x30] sm:$0xff] %vm2590_vm6, %v2580_v47  ;;  %2604 = vst.msk [vmem:[#allocation3 + $0x68] sm:$0xff] %vm2590_vm6, %v2587_v5  ;;  %v2485_v6 = vpop.permute.xlu0 %2484  ;;  %v2491_v18 = vpop.permute.xlu1 %2490  ;;  %v2556_v42 = vsel %vm2540_vm4, %v2539_v4, %v4618_v62 }
 0x5b7   : > { %v2562_v53 = vsel %vm2557_vm5, %v2545_v23, %v2485_v6  ;;  %v2565_v20 = vsel %vm2557_vm5, %v2548_v33, %v2491_v18 }
 0x5b8   : > { %v2578_v46 = vadd.f32 %v2562_v53, %v2320_v52  ;;  %v2581_v51 = vadd.f32 %v2565_v20, %v2323_v63 }
 0x5ba   : > { %2595 = vst.msk [vmem:[#allocation3 + $0x20] sm:$0xff] %vm2590_vm6, %v2578_v46  ;;  %2598 = vst.msk [vmem:[#allocation3 + $0x38] sm:$0xff] %vm2590_vm6, %v2581_v51  ;;  %v2497_v57 = vpop.permute.xlu0 %2496  ;;  %v2487_v34 = vpop.permute.xlu1 %2486 }
 0x5bb   : > { %v2568_v30 = vsel %vm2557_vm5, %v2551_v9, %v2497_v57  ;;  %v2563_v25 = vsel %vm2557_vm5, %v2546_v45, %v2487_v34 }
 0x5bc   : > { %v2584_v21 = vadd.f32 %v2568_v30, %v2326_v59  ;;  %v2579_v7 = vadd.f32 %v2563_v25, %v2321_v55 }
 0x5be   : > { %2601 = vst.msk [vmem:[#allocation3 + $0x50] sm:$0xff] %vm2590_vm6, %v2584_v21  ;;  %2596 = vst.msk [vmem:[#allocation3 + $0x28] sm:$0xff] %vm2590_vm6, %v2579_v7  ;;  %v2493_v15 = vpop.permute.xlu0 %2492  ;;  %v2499_v35 = vpop.permute.xlu1 %2498 }
 0x5bf   : > { %v2566_v13 = vsel %vm2557_vm5, %v2549_v10, %v2493_v15  ;;  %v2569_v3 = vsel %vm2557_vm5, %v2552_v44, %v2499_v35 }
 0x5c0   : > { %v2582_v31 = vadd.f32 %v2566_v13, %v2324_v60  ;;  %v2585_v12 = vadd.f32 %v2569_v3, %v2327_v26 }
 0x5c2   : > { %2599 = vst.msk [vmem:[#allocation3 + $0x40] sm:$0xff] %vm2590_vm6, %v2582_v31  ;;  %2602 = vst.msk [vmem:[#allocation3 + $0x58] sm:$0xff] %vm2590_vm6, %v2585_v12  ;;  %v2505_v38 = vpop.permute.xlu0 %2504  ;;  %v2495_v39 = vpop.permute.xlu1 %2494 }
 0x5c3   : > { %v2572_v17 = vsel %vm2557_vm5, %v2555_v0, %v2505_v38  ;;  %v2567_v41 = vsel %vm2557_vm5, %v2550_v50, %v2495_v39 }
 0x5c4   : > { %v2588_v43 = vadd.f32 %v2572_v17, %v2330_v58  ;;  %v2583_v40 = vadd.f32 %v2567_v41, %v2325_v56 }
 0x5c6   : > { %2605 = vst.msk [vmem:[#allocation3 + $0x70] sm:$0xff] %vm2590_vm6, %v2588_v43  ;;  %2600 = vst.msk [vmem:[#allocation3 + $0x48] sm:$0xff] %vm2590_vm6, %v2583_v40  ;;  %v2507_v47 = vpop.permute.xlu1 %2506  ;;  %2610 = sbr.rel (%p2930_p4) target bundleno = 1702 (0x6a6), region = 48 }
 0x5c7   : > { %v2573_v5 = vsel %vm2557_vm5, %v2556_v42, %v2507_v47 }
 0x5c8   : > { %v2589_v61 = vadd.f32 %v2573_v5, %v2331_v49 }
 0x5ca   : > { %2606 = vst.msk [vmem:[#allocation3 + $0x78] sm:$0xff] %vm2590_vm6, %v2589_v61 }
 0x5cb   : > { %v3521_v54 = vld [vmem:[%s4807_s3 + $0x8] sm:$0xff]   ;;  %v3522_v62 = vld [vmem:[%s4807_s3] sm:$0xff]   ;;  %v2613_v23 = vld [vmem:[#allocation3 + $0x10] sm:$0xff] }
 0x5cc   : > { %3288 = vmatprep.subr.bf16.mxu0 %v3521_v54  ;;  %3320 = vmatprep.subr.bf16.mxu1 %v3521_v54  ;;  %v2611_v8 = vld [vmem:[#allocation3] sm:$0xff]  ;;  %v2612_v22 = vld [vmem:[#allocation3 + $0x8] sm:$0xff]  ;;  %v2614_v33 = vld [vmem:[#allocation3 + $0x18] sm:$0xff] }
 0x5cd   : > { %v2619_v48 = vld [vmem:[#allocation3 + $0x40] sm:$0xff]  ;;  %3289 = vmatpush3.bf16.msra.mxu0 %v3521_v54  ;;  %3322 = vmatpush3.bf16.msra.mxu1 %v3521_v54  ;;  %v2627_v52 = vpack.c.bf16 %v2612_v22, %v2611_v8  ;;  %v2620_v63 = vld [vmem:[#allocation3 + $0x48] sm:$0xff]  ;;  %v2621_v18 = vld [vmem:[#allocation3 + $0x50] sm:$0xff]  ;;  %v2628_v27 = vpack.c.bf16 %v2614_v33, %v2613_v23 }
 0x5ce   : > { %3290 = vmatprep.subr.bf16.mxu0 %v3522_v62  ;;  %3321 = vmatprep.subr.bf16.mxu1 %v3522_v62  ;;  %v2631_v6 = vpack.c.bf16 %v2620_v63, %v2619_v48  ;;  %v2622_v53 = vld [vmem:[#allocation3 + $0x58] sm:$0xff]  ;;  %v2615_v20 = vld [vmem:[#allocation3 + $0x20] sm:$0xff]  ;;  %v2616_v46 = vld [vmem:[#allocation3 + $0x28] sm:$0xff] }
 0x5cf   : > { %3292 = vmatprep.mubr.msk.bf16.mxu0 %vm2590_vm6, %v2627_v52  ;;  %v2623_v51 = vld [vmem:[#allocation3 + $0x60] sm:$0xff]  ;;  %v2624_v1 = vld [vmem:[#allocation3 + $0x68] sm:$0xff]  ;;  %v2632_v36 = vpack.c.bf16 %v2622_v53, %v2621_v18  ;;  %v2629_v29 = vpack.c.bf16 %v2616_v46, %v2615_v20  ;;  %v2617_v55 = vld [vmem:[#allocation3 + $0x30] sm:$0xff] }
 0x5d0   : > { %3300 = vmatprep.mubr.msk.bf16.mxu1 %vm2590_vm6, %v2631_v6  ;;  %v2633_v59 = vpack.c.bf16 %v2624_v1, %v2623_v51  ;;  %v2618_v9 = vld [vmem:[#allocation3 + $0x38] sm:$0xff]  ;;  %v2625_v45 = vld [vmem:[#allocation3 + $0x70] sm:$0xff]  ;;  %v2931_v25 = vld [vmem:[%s4808_s4] ss:$0 sm:$0xff] }
 0x5d1   : > { %3291 = vmatpush3.bf16.msra.mxu0 %v3522_v62  ;;  %3323 = vmatpush3.bf16.msra.mxu1 %v3522_v62  ;;  %v2626_v57 = vld [vmem:[#allocation3 + $0x78] sm:$0xff]  ;;  %v2630_v34 = vpack.c.bf16 %v2618_v9, %v2617_v55 }
 0x5d2   : > { %v2634_v30 = vpack.c.bf16 %v2626_v57, %v2625_v45 }
 0x5d4   : > { %3293 = vmatmul.mubr.msk.bf16.vlgmr.msra.gmra.mxu0 %vm2590_vm6, %v2628_v27  ;;  %3301 = vmatmul.mubr.msk.bf16.vlgmr.msra.gmra.mxu1 %vm2590_vm6, %v2632_v36 }
 0x5d5   : > { %3296 = vmatprep.mubr.msk.bf16.mxu0 %vm2590_vm6, %v2629_v29  ;;  %3304 = vmatprep.mubr.msk.bf16.mxu1 %vm2590_vm6, %v2633_v59 }
 0x5dc   : > { %3297 = vmatmul.mubr.msk.bf16.gmra.mxu0 %vm2590_vm6, %v2630_v34  ;;  %3305 = vmatmul.mubr.msk.bf16.gmra.mxu1 %vm2590_vm6, %v2634_v30 }
 0x694   : > { %v3294_v21 = vpop.f32.mrf.mxu0  ;;  %v3302_v7 = vpop.f32.mrf.mxu1 }
 0x695   : > { %v2725_v28 = vadd.f32 %v3294_v21, %v2931_v25  ;;  %v2757_v16 = vadd.f32 %v3302_v7, %v2931_v25 }
 0x696   : > { %v2716_v37 = vpop.f32.mrf.mxu0  ;;  %v2748_v11 = vpop.f32.mrf.mxu1 }
 0x697   : > { %2781 = vst.msk [vmem:[%s4809_s5 + $0x10] sm:$0xff] %vm2590_vm6, %v2725_v28  ;;  %2789 = vst.msk [vmem:[%s4809_s5 + $0x50] sm:$0xff] %vm2590_vm6, %v2757_v16  ;;  %v2717_v60 = vadd.f32 %v2931_v25, %v2716_v37  ;;  %v2749_v26 = vadd.f32 %v2931_v25, %v2748_v11 }
 0x698   : > { %v3295_v10 = vpop.f32.mrf.mxu0  ;;  %v3303_v44 = vpop.f32.mrf.mxu1 }
 0x699   : > { %2779 = vst.msk [vmem:[%s4809_s5] sm:$0xff] %vm2590_vm6, %v2717_v60  ;;  %2787 = vst.msk [vmem:[%s4809_s5 + $0x40] sm:$0xff] %vm2590_vm6, %v2749_v26  ;;  %v2728_v15 = vadd.f32 %v3295_v10, %v2931_v25  ;;  %v2760_v35 = vadd.f32 %v3303_v44, %v2931_v25 }
 0x69a   : > { %v2719_v13 = vpop.f32.mrf.mxu0  ;;  %v2751_v3 = vpop.f32.mrf.mxu1 }
 0x69b   : > { %2782 = vst.msk [vmem:[%s4809_s5 + $0x18] sm:$0xff] %vm2590_vm6, %v2728_v15  ;;  %2790 = vst.msk [vmem:[%s4809_s5 + $0x58] sm:$0xff] %vm2590_vm6, %v2760_v35  ;;  %v2720_v31 = vadd.f32 %v2931_v25, %v2719_v13  ;;  %v2752_v12 = vadd.f32 %v2931_v25, %v2751_v3 }
 0x69c   : > { %v3298_v32 = vpop.f32.mrf.mxu0  ;;  %v3306_v19 = vpop.f32.mrf.mxu1 }
 0x69d   : > { %2780 = vst.msk [vmem:[%s4809_s5 + $0x8] sm:$0xff] %vm2590_vm6, %v2720_v31  ;;  %2788 = vst.msk [vmem:[%s4809_s5 + $0x48] sm:$0xff] %vm2590_vm6, %v2752_v12  ;;  %v2741_v14 = vadd.f32 %v3298_v32, %v2931_v25  ;;  %v2773_v24 = vadd.f32 %v3306_v19, %v2931_v25 }
 0x69e   : > { %v2732_v58 = vpop.f32.mrf.mxu0  ;;  %v2764_v56 = vpop.f32.mrf.mxu1 }
 0x69f   : > { %2785 = vst.msk [vmem:[%s4809_s5 + $0x30] sm:$0xff] %vm2590_vm6, %v2741_v14  ;;  %2793 = vst.msk [vmem:[%s4809_s5 + $0x70] sm:$0xff] %vm2590_vm6, %v2773_v24  ;;  %v2733_v0 = vadd.f32 %v2931_v25, %v2732_v58  ;;  %v2765_v50 = vadd.f32 %v2931_v25, %v2764_v56 }
 0x6a0   : > { %v3299_v38 = vpop.f32.mrf.mxu0  ;;  %v3307_v39 = vpop.f32.mrf.mxu1 }
 0x6a1   : > { %2783 = vst.msk [vmem:[%s4809_s5 + $0x20] sm:$0xff] %vm2590_vm6, %v2733_v0  ;;  %2791 = vst.msk [vmem:[%s4809_s5 + $0x60] sm:$0xff] %vm2590_vm6, %v2765_v50  ;;  %v2744_v17 = vadd.f32 %v3299_v38, %v2931_v25  ;;  %v2776_v41 = vadd.f32 %v3307_v39, %v2931_v25 }
 0x6a2   : > { %v2735_v43 = vpop.f32.mrf.mxu0  ;;  %v2767_v40 = vpop.f32.mrf.mxu1 }
 0x6a3   : > { %2786 = vst.msk [vmem:[%s4809_s5 + $0x38] sm:$0xff] %vm2590_vm6, %v2744_v17  ;;  %2794 = vst.msk [vmem:[%s4809_s5 + $0x78] sm:$0xff] %vm2590_vm6, %v2776_v41  ;;  %v2736_v2 = vadd.f32 %v2931_v25, %v2735_v43  ;;  %v2768_v4 = vadd.f32 %v2931_v25, %v2767_v40 }
 0x6a5   : > { %2784 = vst.msk [vmem:[%s4809_s5 + $0x28] sm:$0xff] %vm2590_vm6, %v2736_v2  ;;  %2792 = vst.msk [vmem:[%s4809_s5 + $0x68] sm:$0xff] %vm2590_vm6, %v2768_v4 }
 0x6a6 PF: > { %s15_s18 = sadd.s32 1, %s3529_s18  }
 0x6a7   : > { %p12_p5 = scmp.ge.s32.totalorder %s15_s18, 4  }
 0x6a9   :  { %14 = sbr.rel (!%p12_p5) target bundleno = 1 (0x1), region = 72 }

</bundles_post_ra>
